<compile_context>
chip_gen: v7x
topology: tpu7x:2x2x1
jax: 0.10.0
libtpu: 0.0.40
codegen_flags: <defaults>
</compile_context>

<pallas_src>
import numpy as np

import jax
import jax.numpy as jnp
from jax import lax
from jax.experimental import pallas as pl
from jax.experimental.pallas import tpu as pltpu

EPS = 1e-5    # BatchNorm2d default eps
KSIZE = 3     # conv kernel size


# ---------------------------------------------------------------------------
# Fused kernel: 3 x (conv3x3 valid + BatchNorm(batch stats) + ReLU)
# ---------------------------------------------------------------------------
def _make_branch4_kernel(n_batch, c_out, block_dims):
    """block_dims: 3 tuples (H_in, W_in, C_in, H_out, W_out), statically known."""
    assert len(block_dims) == 3

    def kernel(x_ref,
               wb1_ref, b1_ref, g1_ref, bt1_ref, p1_ref,
               wb2_ref, b2_ref, g2_ref, bt2_ref, p2_ref,
               wb3_ref, b3_ref, g3_ref, bt3_ref, p3_ref,
               o_ref):
        block_refs = ((wb1_ref, b1_ref, g1_ref, bt1_ref, p1_ref),
                      (wb2_ref, b2_ref, g2_ref, bt2_ref, p2_ref),
                      (wb3_ref, b3_ref, g3_ref, bt3_ref, p3_ref))

        # Per-sample activations, lane-flat (H, W*C) f32 tiles; live in VMEM/vregs only.
        acts = [x_ref[n] for n in range(n_batch)]

        for (_h_in, _w_in, _c_in, h_out, w_out), \
                (wb_ref, b_ref, g_ref, bt_ref, p_ref) in zip(block_dims, block_refs):

            # ---- Conv3x3 (valid): 3 banded MXU matmuls per sample (im2col folded into
            #      the precomputed weights); bf16 operands, f32 accumulation.
            conv = []
            for a in acts:
                acc = jnp.dot(a[0:h_out, :].astype(jnp.bfloat16), wb_ref[0],
                              preferred_element_type=jnp.float32)
                for kh in range(1, KSIZE):
                    acc = acc + jnp.dot(a[kh:kh + h_out, :].astype(jnp.bfloat16),
                                        wb_ref[kh],
                                        preferred_element_type=jnp.float32)
                conv.append(acc + b_ref[...])          # conv bias, (1, W_out*C_out)

            # ---- BatchNorm2d, training mode (global batch stats, biased variance),
            #      single pass: accumulate sum and sum-of-squares; p_ref is a 0/1
            #      projection that sums over the W_out positions of each channel and
            #      broadcasts the per-channel totals back to every lane.
            s_l = None
            ss_l = None
            for acc in conv:
                ps = jnp.dot(acc, p_ref[...], preferred_element_type=jnp.float32)
                pss = jnp.dot(acc * acc, p_ref[...], preferred_element_type=jnp.float32)
                s_l = ps if s_l is None else s_l + ps
                ss_l = pss if ss_l is None else ss_l + pss
            s_l = jnp.sum(s_l, axis=0, keepdims=True)       # (1, lanes) per-channel totals
            ss_l = jnp.sum(ss_l, axis=0, keepdims=True)
            inv_cnt = 1.0 / float(n_batch * h_out * w_out)
            mean_l = s_l * inv_cnt
            var_l = jnp.maximum(ss_l * inv_cnt - mean_l * mean_l, 0.0)
            scale_l = g_ref[...] * lax.rsqrt(var_l + EPS)
            shift_l = bt_ref[...] - mean_l * scale_l

            # ---- Affine + ReLU.  Branch4's trailing F.relu is idempotent -> folded here.
            acts = [jnp.maximum(acc * scale_l + shift_l, 0.0) for acc in conv]

        for n in range(n_batch):
            o_ref[n] = acts[n]

    return kernel


# ---------------------------------------------------------------------------
# Host-side operand preparation (done once, plain numpy)
# ---------------------------------------------------------------------------
def _prep_block_operands(w_oihw, bias, gamma, beta, h_in, w_in):
    """Build lane-flat operands for one CNNBlock.

    wb[kh, w*C_in + ci, wo*C_out + co] = w[co, ci, kh, w - wo]  for 0 <= w - wo < 3,
    so that  conv_rows = act[kh:kh+H_out, :] @ wb[kh]  summed over kh gives the
    (H_out, W_out*C_out) conv output in the same lane-flat layout as the input.
    """
    w_np = np.asarray(w_oihw, np.float32)                  # (C_out, C_in, 3, 3) OIHW
    c_out, c_in, kh_sz, kw_sz = w_np.shape
    h_out, w_out = h_in - kh_sz + 1, w_in - kw_sz + 1
    lanes = w_out * c_out

    wb = np.zeros((kh_sz, w_in * c_in, lanes), np.float32)
    for kh in range(kh_sz):
        for kw in range(kw_sz):
            blk = w_np[:, :, kh, kw].T                     # (C_in, C_out)
            for wo in range(w_out):
                r = (wo + kw) * c_in
                c = wo * c_out
                wb[kh, r:r + c_in, c:c + c_out] = blk

    # 0/1 projection: per-channel sum over the W_out positions, replicated per lane.
    proj = np.kron(np.ones((w_out, w_out), np.float32), np.eye(c_out, dtype=np.float32))
    bias_l = np.tile(np.asarray(bias, np.float32), w_out)[None, :]
    gamma_l = np.tile(np.asarray(gamma, np.float32), w_out)[None, :]
    beta_l = np.tile(np.asarray(beta, np.float32), w_out)[None, :]

    ops = (jnp.asarray(wb, jnp.bfloat16),                  # MXU operand in bf16
           jnp.asarray(bias_l), jnp.asarray(gamma_l), jnp.asarray(beta_l),
           jnp.asarray(proj))
    return ops, (h_out, w_out)


def make_branch4_forward(n_batch, c_in, c_out, h, w, params):
    """params: 3 tuples (w_oihw, bias, gamma, beta) in PyTorch layouts."""
    operands = []
    block_dims = []
    hh, ww, cc = h, w, c_in
    for (wt, b, g, bt) in params:
        ops, (ho, wo) = _prep_block_operands(wt, b, g, bt, hh, ww)
        operands.extend(ops)
        block_dims.append((hh, ww, cc, ho, wo))
        hh, ww, cc = ho, wo, wt.shape[0]
    h_f, w_f = hh, ww
    operands = tuple(operands)

    kernel = _make_branch4_kernel(n_batch, c_out, block_dims)
    vmem = pl.BlockSpec(memory_space=pltpu.MemorySpace.VMEM)

    # Single fused, gridless pallas_call: the whole toy problem (<0.5 MiB of operands)
    # is VMEM resident and inter-block activations never touch HBM.
    # TODO(synk): for real VGG-sized inputs, add a batch/row-tile grid with BlockSpec
    # tiling, dimension_semantics=("parallel",...) (v7x second TensorCore) and an
    # explicit vmem_limit_bytes; that needs a cross-tile sum/sumsq reduction so the
    # BatchNorm batch statistics stay global, as flagged in the review.
    call = pl.pallas_call(
        kernel,
        out_shape=jax.ShapeDtypeStruct((n_batch, h_f, w_f * c_out), jnp.float32),
        in_specs=[vmem] * (1 + len(operands)),
        out_specs=vmem,
    )

    @jax.jit
    def forward(x_nchw, ops):
        # NCHW -> lane-flat (N, H, W*C).  Boundary relayout stays in XLA (a few KB).
        x = jnp.transpose(x_nchw, (0, 2, 3, 1)).reshape(n_batch, h, w * c_in)
        y = call(x, *ops)                                  # (N, H_f, W_f*C_out)
        y = y.reshape(n_batch, h_f, w_f, c_out)
        return jnp.transpose(y, (0, 3, 1, 2))              # -> NCHW

    return lambda x_nchw: forward(x_nchw, operands)


# ---------------------------------------------------------------------------
# Synthetic parameters (PyTorch layouts) and a pure-XLA f32 reference
# ---------------------------------------------------------------------------
def init_branch4_params(key, in_channels, out_channels):
    params = []
    cin = in_channels
    for _ in range(3):
        key, k_w, k_b = jax.random.split(key, 3)
        wt = 0.1 * jax.random.normal(k_w, (out_channels, cin, KSIZE, KSIZE), jnp.float32)
        b = 0.1 * jax.random.normal(k_b, (out_channels,), jnp.float32)
        gamma = jnp.ones((out_channels,), jnp.float32)     # fresh BatchNorm2d init
        beta = jnp.zeros((out_channels,), jnp.float32)
        params.append((wt, b, gamma, beta))
        cin = out_channels
    return params


def reference_forward(x_nchw, params):
    """f32 reference of Branch4 (training-mode BatchNorm, biased variance)."""
    x = x_nchw
    for (wt, b, g, bt) in params:
        n, c, h, w = x.shape
        ho, wo = h - KSIZE + 1, w - KSIZE + 1
        acc = jnp.zeros((n, wt.shape[0], ho, wo), jnp.float32)
        for kh in range(KSIZE):
            for kw in range(KSIZE):
                acc = acc + jnp.einsum('ncij,oc->noij',
                                       x[:, :, kh:kh + ho, kw:kw + wo],
                                       wt[:, :, kh, kw],
                                       precision=lax.Precision.HIGHEST)
        acc = acc + b[None, :, None, None]
        mean = jnp.mean(acc, axis=(0, 2, 3), keepdims=True)
        var = jnp.mean((acc - mean) ** 2, axis=(0, 2, 3), keepdims=True)
        y = (acc - mean) * lax.rsqrt(var + EPS)
        y = y * g[None, :, None, None] + bt[None, :, None, None]
        x = jnp.maximum(y, 0.0)
    return jnp.maximum(x, 0.0)


if __name__ == "__main__":
    key = jax.random.PRNGKey(0)
    key, kx = jax.random.split(key)

    N, CIN, COUT, H, W = 2, 4, 8, 16, 16
    x = jax.random.normal(kx, (N, CIN, H, W), jnp.float32)
    params = init_branch4_params(key, CIN, COUT)

    branch4 = make_branch4_forward(N, CIN, COUT, H, W, params)

    out = jax.block_until_ready(branch4(x))
    assert out.shape == (N, COUT, H - 6, W - 6), out.shape
    assert bool(jnp.all(jnp.isfinite(out)))

    # Validate against the f32 XLA reference.  The kernel feeds the MXU bf16 conv
    # operands (f32 accumulate), so use a correspondingly loose tolerance.
    ref = jax.block_until_ready(reference_forward(x, params))
    np.testing.assert_allclose(np.asarray(out), np.asarray(ref), atol=1e-1, rtol=1e-1)

    print("KERNEL_OK")
</pallas_src>

<mosaic_0001>
module attributes {stable_mosaic.version = 11 : i64} {
  func.func @kernel(%arg0: memref<2x16x64xf32, #tpu.memory_space<vmem>>, %arg1: memref<3x64x112xbf16, #tpu.memory_space<vmem>>, %arg2: memref<1x112xf32, #tpu.memory_space<vmem>>, %arg3: memref<1x112xf32, #tpu.memory_space<vmem>>, %arg4: memref<1x112xf32, #tpu.memory_space<vmem>>, %arg5: memref<112x112xf32, #tpu.memory_space<vmem>>, %arg6: memref<3x112x96xbf16, #tpu.memory_space<vmem>>, %arg7: memref<1x96xf32, #tpu.memory_space<vmem>>, %arg8: memref<1x96xf32, #tpu.memory_space<vmem>>, %arg9: memref<1x96xf32, #tpu.memory_space<vmem>>, %arg10: memref<96x96xf32, #tpu.memory_space<vmem>>, %arg11: memref<3x96x80xbf16, #tpu.memory_space<vmem>>, %arg12: memref<1x80xf32, #tpu.memory_space<vmem>>, %arg13: memref<1x80xf32, #tpu.memory_space<vmem>>, %arg14: memref<1x80xf32, #tpu.memory_space<vmem>>, %arg15: memref<80x80xf32, #tpu.memory_space<vmem>>, %arg16: memref<2x10x80xf32, #tpu.memory_space<vmem>>) attributes {dimension_semantics = [], scalar_prefetch = 0 : i64, scratch_operands = 0 : i64, tpu.core_type = #tpu.core_type<tc>} {
    %c0 = arith.constant 0 : index
    %c0_0 = arith.constant 0 : index
    %c0_1 = arith.constant 0 : index
    %0 = vector.load %arg0[%c0, %c0_0, %c0_1] : memref<2x16x64xf32, #tpu.memory_space<vmem>>, vector<1x16x64xf32>
    %1 = vector.shape_cast %0 : vector<1x16x64xf32> to vector<16x64xf32>
    %c1 = arith.constant 1 : index
    %c0_2 = arith.constant 0 : index
    %c0_3 = arith.constant 0 : index
    %2 = vector.load %arg0[%c1, %c0_2, %c0_3] : memref<2x16x64xf32, #tpu.memory_space<vmem>>, vector<1x16x64xf32>
    %3 = vector.shape_cast %2 : vector<1x16x64xf32> to vector<16x64xf32>
    %4 = vector.extract_strided_slice %1 {offsets = [0, 0], sizes = [14, 64], strides = [1, 1]} : vector<16x64xf32> to vector<14x64xf32>
    %5 = arith.truncf %4 : vector<14x64xf32> to vector<14x64xbf16>
    %c0_4 = arith.constant 0 : index
    %c0_5 = arith.constant 0 : index
    %c0_6 = arith.constant 0 : index
    %6 = vector.load %arg1[%c0_4, %c0_5, %c0_6] : memref<3x64x112xbf16, #tpu.memory_space<vmem>>, vector<1x64x112xbf16>
    %7 = vector.shape_cast %6 : vector<1x64x112xbf16> to vector<64x112xbf16>
    %cst = arith.constant dense<0.000000e+00> : vector<14x112xf32>
    %8 = tpu.matmul %5, %7, %cst {dimension_numbers = #tpu.dot_dimension_numbers<[1], [0], [0], [1], [0, 0, 1, 1], [], []>} : vector<14x64xbf16>, vector<64x112xbf16>, vector<14x112xf32> -> vector<14x112xf32>
    %9 = vector.extract_strided_slice %1 {offsets = [1, 0], sizes = [14, 64], strides = [1, 1]} : vector<16x64xf32> to vector<14x64xf32>
    %10 = arith.truncf %9 : vector<14x64xf32> to vector<14x64xbf16>
    %c1_7 = arith.constant 1 : index
    %c0_8 = arith.constant 0 : index
    %c0_9 = arith.constant 0 : index
    %11 = vector.load %arg1[%c1_7, %c0_8, %c0_9] : memref<3x64x112xbf16, #tpu.memory_space<vmem>>, vector<1x64x112xbf16>
    %12 = vector.shape_cast %11 : vector<1x64x112xbf16> to vector<64x112xbf16>
    %cst_10 = arith.constant dense<0.000000e+00> : vector<14x112xf32>
    %13 = tpu.matmul %10, %12, %cst_10 {dimension_numbers = #tpu.dot_dimension_numbers<[1], [0], [0], [1], [0, 0, 1, 1], [], []>} : vector<14x64xbf16>, vector<64x112xbf16>, vector<14x112xf32> -> vector<14x112xf32>
    %14 = arith.addf %8, %13 : vector<14x112xf32>
    %15 = vector.extract_strided_slice %1 {offsets = [2, 0], sizes = [14, 64], strides = [1, 1]} : vector<16x64xf32> to vector<14x64xf32>
    %16 = arith.truncf %15 : vector<14x64xf32> to vector<14x64xbf16>
    %c2 = arith.constant 2 : index
    %c0_11 = arith.constant 0 : index
    %c0_12 = arith.constant 0 : index
    %17 = vector.load %arg1[%c2, %c0_11, %c0_12] : memref<3x64x112xbf16, #tpu.memory_space<vmem>>, vector<1x64x112xbf16>
    %18 = vector.shape_cast %17 : vector<1x64x112xbf16> to vector<64x112xbf16>
    %cst_13 = arith.constant dense<0.000000e+00> : vector<14x112xf32>
    %19 = tpu.matmul %16, %18, %cst_13 {dimension_numbers = #tpu.dot_dimension_numbers<[1], [0], [0], [1], [0, 0, 1, 1], [], []>} : vector<14x64xbf16>, vector<64x112xbf16>, vector<14x112xf32> -> vector<14x112xf32>
    %20 = arith.addf %14, %19 : vector<14x112xf32>
    %c0_14 = arith.constant 0 : index
    %c0_15 = arith.constant 0 : index
    %21 = vector.load %arg2[%c0_14, %c0_15] : memref<1x112xf32, #tpu.memory_space<vmem>>, vector<1x112xf32>
    %22 = vector.broadcast %21 : vector<1x112xf32> to vector<14x112xf32>
    %23 = arith.addf %20, %22 : vector<14x112xf32>
    %24 = vector.extract_strided_slice %3 {offsets = [0, 0], sizes = [14, 64], strides = [1, 1]} : vector<16x64xf32> to vector<14x64xf32>
    %25 = arith.truncf %24 : vector<14x64xf32> to vector<14x64xbf16>
    %c0_16 = arith.constant 0 : index
    %c0_17 = arith.constant 0 : index
    %c0_18 = arith.constant 0 : index
    %26 = vector.load %arg1[%c0_16, %c0_17, %c0_18] : memref<3x64x112xbf16, #tpu.memory_space<vmem>>, vector<1x64x112xbf16>
    %27 = vector.shape_cast %26 : vector<1x64x112xbf16> to vector<64x112xbf16>
    %cst_19 = arith.constant dense<0.000000e+00> : vector<14x112xf32>
    %28 = tpu.matmul %25, %27, %cst_19 {dimension_numbers = #tpu.dot_dimension_numbers<[1], [0], [0], [1], [0, 0, 1, 1], [], []>} : vector<14x64xbf16>, vector<64x112xbf16>, vector<14x112xf32> -> vector<14x112xf32>
    %29 = vector.extract_strided_slice %3 {offsets = [1, 0], sizes = [14, 64], strides = [1, 1]} : vector<16x64xf32> to vector<14x64xf32>
    %30 = arith.truncf %29 : vector<14x64xf32> to vector<14x64xbf16>
    %c1_20 = arith.constant 1 : index
    %c0_21 = arith.constant 0 : index
    %c0_22 = arith.constant 0 : index
    %31 = vector.load %arg1[%c1_20, %c0_21, %c0_22] : memref<3x64x112xbf16, #tpu.memory_space<vmem>>, vector<1x64x112xbf16>
    %32 = vector.shape_cast %31 : vector<1x64x112xbf16> to vector<64x112xbf16>
    %cst_23 = arith.constant dense<0.000000e+00> : vector<14x112xf32>
    %33 = tpu.matmul %30, %32, %cst_23 {dimension_numbers = #tpu.dot_dimension_numbers<[1], [0], [0], [1], [0, 0, 1, 1], [], []>} : vector<14x64xbf16>, vector<64x112xbf16>, vector<14x112xf32> -> vector<14x112xf32>
    %34 = arith.addf %28, %33 : vector<14x112xf32>
    %35 = vector.extract_strided_slice %3 {offsets = [2, 0], sizes = [14, 64], strides = [1, 1]} : vector<16x64xf32> to vector<14x64xf32>
    %36 = arith.truncf %35 : vector<14x64xf32> to vector<14x64xbf16>
    %c2_24 = arith.constant 2 : index
    %c0_25 = arith.constant 0 : index
    %c0_26 = arith.constant 0 : index
    %37 = vector.load %arg1[%c2_24, %c0_25, %c0_26] : memref<3x64x112xbf16, #tpu.memory_space<vmem>>, vector<1x64x112xbf16>
    %38 = vector.shape_cast %37 : vector<1x64x112xbf16> to vector<64x112xbf16>
    %cst_27 = arith.constant dense<0.000000e+00> : vector<14x112xf32>
    %39 = tpu.matmul %36, %38, %cst_27 {dimension_numbers = #tpu.dot_dimension_numbers<[1], [0], [0], [1], [0, 0, 1, 1], [], []>} : vector<14x64xbf16>, vector<64x112xbf16>, vector<14x112xf32> -> vector<14x112xf32>
    %40 = arith.addf %34, %39 : vector<14x112xf32>
    %c0_28 = arith.constant 0 : index
    %c0_29 = arith.constant 0 : index
    %41 = vector.load %arg2[%c0_28, %c0_29] : memref<1x112xf32, #tpu.memory_space<vmem>>, vector<1x112xf32>
    %42 = vector.broadcast %41 : vector<1x112xf32> to vector<14x112xf32>
    %43 = arith.addf %40, %42 : vector<14x112xf32>
    %c0_30 = arith.constant 0 : index
    %c0_31 = arith.constant 0 : index
    %44 = vector.load %arg5[%c0_30, %c0_31] : memref<112x112xf32, #tpu.memory_space<vmem>>, vector<112x112xf32>
    %cst_32 = arith.constant dense<0.000000e+00> : vector<14x112xf32>
    %45 = tpu.matmul %23, %44, %cst_32 {dimension_numbers = #tpu.dot_dimension_numbers<[1], [0], [0], [1], [0, 0, 1, 1], [], []>} : vector<14x112xf32>, vector<112x112xf32>, vector<14x112xf32> -> vector<14x112xf32>
    %46 = arith.mulf %23, %23 : vector<14x112xf32>
    %c0_33 = arith.constant 0 : index
    %c0_34 = arith.constant 0 : index
    %47 = vector.load %arg5[%c0_33, %c0_34] : memref<112x112xf32, #tpu.memory_space<vmem>>, vector<112x112xf32>
    %cst_35 = arith.constant dense<0.000000e+00> : vector<14x112xf32>
    %48 = tpu.matmul %46, %47, %cst_35 {dimension_numbers = #tpu.dot_dimension_numbers<[1], [0], [0], [1], [0, 0, 1, 1], [], []>} : vector<14x112xf32>, vector<112x112xf32>, vector<14x112xf32> -> vector<14x112xf32>
    %c0_36 = arith.constant 0 : index
    %c0_37 = arith.constant 0 : index
    %49 = vector.load %arg5[%c0_36, %c0_37] : memref<112x112xf32, #tpu.memory_space<vmem>>, vector<112x112xf32>
    %cst_38 = arith.constant dense<0.000000e+00> : vector<14x112xf32>
    %50 = tpu.matmul %43, %49, %cst_38 {dimension_numbers = #tpu.dot_dimension_numbers<[1], [0], [0], [1], [0, 0, 1, 1], [], []>} : vector<14x112xf32>, vector<112x112xf32>, vector<14x112xf32> -> vector<14x112xf32>
    %51 = arith.mulf %43, %43 : vector<14x112xf32>
    %c0_39 = arith.constant 0 : index
    %c0_40 = arith.constant 0 : index
    %52 = vector.load %arg5[%c0_39, %c0_40] : memref<112x112xf32, #tpu.memory_space<vmem>>, vector<112x112xf32>
    %cst_41 = arith.constant dense<0.000000e+00> : vector<14x112xf32>
    %53 = tpu.matmul %51, %52, %cst_41 {dimension_numbers = #tpu.dot_dimension_numbers<[1], [0], [0], [1], [0, 0, 1, 1], [], []>} : vector<14x112xf32>, vector<112x112xf32>, vector<14x112xf32> -> vector<14x112xf32>
    %54 = arith.addf %45, %50 : vector<14x112xf32>
    %55 = arith.addf %48, %53 : vector<14x112xf32>
    %cst_42 = arith.constant dense<0.000000e+00> : vector<112xf32>
    %56 = vector.multi_reduction <add>, %54, %cst_42 [0] : vector<14x112xf32> to vector<112xf32>
    %57 = vector.shape_cast %56 : vector<112xf32> to vector<1x112xf32>
    %cst_43 = arith.constant dense<0.000000e+00> : vector<112xf32>
    %58 = vector.multi_reduction <add>, %55, %cst_43 [0] : vector<14x112xf32> to vector<112xf32>
    %59 = vector.shape_cast %58 : vector<112xf32> to vector<1x112xf32>
    %cst_44 = arith.constant 0.00255102036 : f32
    %60 = vector.broadcast %cst_44 : f32 to vector<1x112xf32>
    %61 = arith.mulf %57, %60 : vector<1x112xf32>
    %cst_45 = arith.constant 0.00255102036 : f32
    %62 = vector.broadcast %cst_45 : f32 to vector<1x112xf32>
    %63 = arith.mulf %59, %62 : vector<1x112xf32>
    %64 = arith.mulf %61, %61 : vector<1x112xf32>
    %65 = arith.subf %63, %64 : vector<1x112xf32>
    %cst_46 = arith.constant 0.000000e+00 : f32
    %66 = vector.broadcast %cst_46 : f32 to vector<1x112xf32>
    %67 = arith.maximumf %65, %66 : vector<1x112xf32>
    %c0_47 = arith.constant 0 : index
    %c0_48 = arith.constant 0 : index
    %68 = vector.load %arg3[%c0_47, %c0_48] : memref<1x112xf32, #tpu.memory_space<vmem>>, vector<1x112xf32>
    %cst_49 = arith.constant 9.99999974E-6 : f32
    %69 = vector.broadcast %cst_49 : f32 to vector<1x112xf32>
    %70 = arith.addf %67, %69 : vector<1x112xf32>
    %71 = math.rsqrt %70 : vector<1x112xf32>
    %72 = arith.mulf %68, %71 : vector<1x112xf32>
    %c0_50 = arith.constant 0 : index
    %c0_51 = arith.constant 0 : index
    %73 = vector.load %arg4[%c0_50, %c0_51] : memref<1x112xf32, #tpu.memory_space<vmem>>, vector<1x112xf32>
    %74 = arith.mulf %61, %72 : vector<1x112xf32>
    %75 = arith.subf %73, %74 : vector<1x112xf32>
    %76 = vector.broadcast %72 : vector<1x112xf32> to vector<14x112xf32>
    %77 = arith.mulf %23, %76 : vector<14x112xf32>
    %78 = vector.broadcast %75 : vector<1x112xf32> to vector<14x112xf32>
    %79 = arith.addf %77, %78 : vector<14x112xf32>
    %cst_52 = arith.constant 0.000000e+00 : f32
    %80 = vector.broadcast %cst_52 : f32 to vector<14x112xf32>
    %81 = arith.maximumf %79, %80 : vector<14x112xf32>
    %82 = vector.broadcast %72 : vector<1x112xf32> to vector<14x112xf32>
    %83 = arith.mulf %43, %82 : vector<14x112xf32>
    %84 = vector.broadcast %75 : vector<1x112xf32> to vector<14x112xf32>
    %85 = arith.addf %83, %84 : vector<14x112xf32>
    %cst_53 = arith.constant 0.000000e+00 : f32
    %86 = vector.broadcast %cst_53 : f32 to vector<14x112xf32>
    %87 = arith.maximumf %85, %86 : vector<14x112xf32>
    %88 = vector.extract_strided_slice %81 {offsets = [0, 0], sizes = [12, 112], strides = [1, 1]} : vector<14x112xf32> to vector<12x112xf32>
    %89 = arith.truncf %88 : vector<12x112xf32> to vector<12x112xbf16>
    %c0_54 = arith.constant 0 : index
    %c0_55 = arith.constant 0 : index
    %c0_56 = arith.constant 0 : index
    %90 = vector.load %arg6[%c0_54, %c0_55, %c0_56] : memref<3x112x96xbf16, #tpu.memory_space<vmem>>, vector<1x112x96xbf16>
    %91 = vector.shape_cast %90 : vector<1x112x96xbf16> to vector<112x96xbf16>
    %cst_57 = arith.constant dense<0.000000e+00> : vector<12x96xf32>
    %92 = tpu.matmul %89, %91, %cst_57 {dimension_numbers = #tpu.dot_dimension_numbers<[1], [0], [0], [1], [0, 0, 1, 1], [], []>} : vector<12x112xbf16>, vector<112x96xbf16>, vector<12x96xf32> -> vector<12x96xf32>
    %93 = vector.extract_strided_slice %81 {offsets = [1, 0], sizes = [12, 112], strides = [1, 1]} : vector<14x112xf32> to vector<12x112xf32>
    %94 = arith.truncf %93 : vector<12x112xf32> to vector<12x112xbf16>
    %c1_58 = arith.constant 1 : index
    %c0_59 = arith.constant 0 : index
    %c0_60 = arith.constant 0 : index
    %95 = vector.load %arg6[%c1_58, %c0_59, %c0_60] : memref<3x112x96xbf16, #tpu.memory_space<vmem>>, vector<1x112x96xbf16>
    %96 = vector.shape_cast %95 : vector<1x112x96xbf16> to vector<112x96xbf16>
    %cst_61 = arith.constant dense<0.000000e+00> : vector<12x96xf32>
    %97 = tpu.matmul %94, %96, %cst_61 {dimension_numbers = #tpu.dot_dimension_numbers<[1], [0], [0], [1], [0, 0, 1, 1], [], []>} : vector<12x112xbf16>, vector<112x96xbf16>, vector<12x96xf32> -> vector<12x96xf32>
    %98 = arith.addf %92, %97 : vector<12x96xf32>
    %99 = vector.extract_strided_slice %81 {offsets = [2, 0], sizes = [12, 112], strides = [1, 1]} : vector<14x112xf32> to vector<12x112xf32>
    %100 = arith.truncf %99 : vector<12x112xf32> to vector<12x112xbf16>
    %c2_62 = arith.constant 2 : index
    %c0_63 = arith.constant 0 : index
    %c0_64 = arith.constant 0 : index
    %101 = vector.load %arg6[%c2_62, %c0_63, %c0_64] : memref<3x112x96xbf16, #tpu.memory_space<vmem>>, vector<1x112x96xbf16>
    %102 = vector.shape_cast %101 : vector<1x112x96xbf16> to vector<112x96xbf16>
    %cst_65 = arith.constant dense<0.000000e+00> : vector<12x96xf32>
    %103 = tpu.matmul %100, %102, %cst_65 {dimension_numbers = #tpu.dot_dimension_numbers<[1], [0], [0], [1], [0, 0, 1, 1], [], []>} : vector<12x112xbf16>, vector<112x96xbf16>, vector<12x96xf32> -> vector<12x96xf32>
    %104 = arith.addf %98, %103 : vector<12x96xf32>
    %c0_66 = arith.constant 0 : index
    %c0_67 = arith.constant 0 : index
    %105 = vector.load %arg7[%c0_66, %c0_67] : memref<1x96xf32, #tpu.memory_space<vmem>>, vector<1x96xf32>
    %106 = vector.broadcast %105 : vector<1x96xf32> to vector<12x96xf32>
    %107 = arith.addf %104, %106 : vector<12x96xf32>
    %108 = vector.extract_strided_slice %87 {offsets = [0, 0], sizes = [12, 112], strides = [1, 1]} : vector<14x112xf32> to vector<12x112xf32>
    %109 = arith.truncf %108 : vector<12x112xf32> to vector<12x112xbf16>
    %c0_68 = arith.constant 0 : index
    %c0_69 = arith.constant 0 : index
    %c0_70 = arith.constant 0 : index
    %110 = vector.load %arg6[%c0_68, %c0_69, %c0_70] : memref<3x112x96xbf16, #tpu.memory_space<vmem>>, vector<1x112x96xbf16>
    %111 = vector.shape_cast %110 : vector<1x112x96xbf16> to vector<112x96xbf16>
    %cst_71 = arith.constant dense<0.000000e+00> : vector<12x96xf32>
    %112 = tpu.matmul %109, %111, %cst_71 {dimension_numbers = #tpu.dot_dimension_numbers<[1], [0], [0], [1], [0, 0, 1, 1], [], []>} : vector<12x112xbf16>, vector<112x96xbf16>, vector<12x96xf32> -> vector<12x96xf32>
    %113 = vector.extract_strided_slice %87 {offsets = [1, 0], sizes = [12, 112], strides = [1, 1]} : vector<14x112xf32> to vector<12x112xf32>
    %114 = arith.truncf %113 : vector<12x112xf32> to vector<12x112xbf16>
    %c1_72 = arith.constant 1 : index
    %c0_73 = arith.constant 0 : index
    %c0_74 = arith.constant 0 : index
    %115 = vector.load %arg6[%c1_72, %c0_73, %c0_74] : memref<3x112x96xbf16, #tpu.memory_space<vmem>>, vector<1x112x96xbf16>
    %116 = vector.shape_cast %115 : vector<1x112x96xbf16> to vector<112x96xbf16>
    %cst_75 = arith.constant dense<0.000000e+00> : vector<12x96xf32>
    %117 = tpu.matmul %114, %116, %cst_75 {dimension_numbers = #tpu.dot_dimension_numbers<[1], [0], [0], [1], [0, 0, 1, 1], [], []>} : vector<12x112xbf16>, vector<112x96xbf16>, vector<12x96xf32> -> vector<12x96xf32>
    %118 = arith.addf %112, %117 : vector<12x96xf32>
    %119 = vector.extract_strided_slice %87 {offsets = [2, 0], sizes = [12, 112], strides = [1, 1]} : vector<14x112xf32> to vector<12x112xf32>
    %120 = arith.truncf %119 : vector<12x112xf32> to vector<12x112xbf16>
    %c2_76 = arith.constant 2 : index
    %c0_77 = arith.constant 0 : index
    %c0_78 = arith.constant 0 : index
    %121 = vector.load %arg6[%c2_76, %c0_77, %c0_78] : memref<3x112x96xbf16, #tpu.memory_space<vmem>>, vector<1x112x96xbf16>
    %122 = vector.shape_cast %121 : vector<1x112x96xbf16> to vector<112x96xbf16>
    %cst_79 = arith.constant dense<0.000000e+00> : vector<12x96xf32>
    %123 = tpu.matmul %120, %122, %cst_79 {dimension_numbers = #tpu.dot_dimension_numbers<[1], [0], [0], [1], [0, 0, 1, 1], [], []>} : vector<12x112xbf16>, vector<112x96xbf16>, vector<12x96xf32> -> vector<12x96xf32>
    %124 = arith.addf %118, %123 : vector<12x96xf32>
    %c0_80 = arith.constant 0 : index
    %c0_81 = arith.constant 0 : index
    %125 = vector.load %arg7[%c0_80, %c0_81] : memref<1x96xf32, #tpu.memory_space<vmem>>, vector<1x96xf32>
    %126 = vector.broadcast %125 : vector<1x96xf32> to vector<12x96xf32>
    %127 = arith.addf %124, %126 : vector<12x96xf32>
    %c0_82 = arith.constant 0 : index
    %c0_83 = arith.constant 0 : index
    %128 = vector.load %arg10[%c0_82, %c0_83] : memref<96x96xf32, #tpu.memory_space<vmem>>, vector<96x96xf32>
    %cst_84 = arith.constant dense<0.000000e+00> : vector<12x96xf32>
    %129 = tpu.matmul %107, %128, %cst_84 {dimension_numbers = #tpu.dot_dimension_numbers<[1], [0], [0], [1], [0, 0, 1, 1], [], []>} : vector<12x96xf32>, vector<96x96xf32>, vector<12x96xf32> -> vector<12x96xf32>
    %130 = arith.mulf %107, %107 : vector<12x96xf32>
    %c0_85 = arith.constant 0 : index
    %c0_86 = arith.constant 0 : index
    %131 = vector.load %arg10[%c0_85, %c0_86] : memref<96x96xf32, #tpu.memory_space<vmem>>, vector<96x96xf32>
    %cst_87 = arith.constant dense<0.000000e+00> : vector<12x96xf32>
    %132 = tpu.matmul %130, %131, %cst_87 {dimension_numbers = #tpu.dot_dimension_numbers<[1], [0], [0], [1], [0, 0, 1, 1], [], []>} : vector<12x96xf32>, vector<96x96xf32>, vector<12x96xf32> -> vector<12x96xf32>
    %c0_88 = arith.constant 0 : index
    %c0_89 = arith.constant 0 : index
    %133 = vector.load %arg10[%c0_88, %c0_89] : memref<96x96xf32, #tpu.memory_space<vmem>>, vector<96x96xf32>
    %cst_90 = arith.constant dense<0.000000e+00> : vector<12x96xf32>
    %134 = tpu.matmul %127, %133, %cst_90 {dimension_numbers = #tpu.dot_dimension_numbers<[1], [0], [0], [1], [0, 0, 1, 1], [], []>} : vector<12x96xf32>, vector<96x96xf32>, vector<12x96xf32> -> vector<12x96xf32>
    %135 = arith.mulf %127, %127 : vector<12x96xf32>
    %c0_91 = arith.constant 0 : index
    %c0_92 = arith.constant 0 : index
    %136 = vector.load %arg10[%c0_91, %c0_92] : memref<96x96xf32, #tpu.memory_space<vmem>>, vector<96x96xf32>
    %cst_93 = arith.constant dense<0.000000e+00> : vector<12x96xf32>
    %137 = tpu.matmul %135, %136, %cst_93 {dimension_numbers = #tpu.dot_dimension_numbers<[1], [0], [0], [1], [0, 0, 1, 1], [], []>} : vector<12x96xf32>, vector<96x96xf32>, vector<12x96xf32> -> vector<12x96xf32>
    %138 = arith.addf %129, %134 : vector<12x96xf32>
    %139 = arith.addf %132, %137 : vector<12x96xf32>
    %cst_94 = arith.constant dense<0.000000e+00> : vector<96xf32>
    %140 = vector.multi_reduction <add>, %138, %cst_94 [0] : vector<12x96xf32> to vector<96xf32>
    %141 = vector.shape_cast %140 : vector<96xf32> to vector<1x96xf32>
    %cst_95 = arith.constant dense<0.000000e+00> : vector<96xf32>
    %142 = vector.multi_reduction <add>, %139, %cst_95 [0] : vector<12x96xf32> to vector<96xf32>
    %143 = vector.shape_cast %142 : vector<96xf32> to vector<1x96xf32>
    %cst_96 = arith.constant 0.00347222225 : f32
    %144 = vector.broadcast %cst_96 : f32 to vector<1x96xf32>
    %145 = arith.mulf %141, %144 : vector<1x96xf32>
    %cst_97 = arith.constant 0.00347222225 : f32
    %146 = vector.broadcast %cst_97 : f32 to vector<1x96xf32>
    %147 = arith.mulf %143, %146 : vector<1x96xf32>
    %148 = arith.mulf %145, %145 : vector<1x96xf32>
    %149 = arith.subf %147, %148 : vector<1x96xf32>
    %cst_98 = arith.constant 0.000000e+00 : f32
    %150 = vector.broadcast %cst_98 : f32 to vector<1x96xf32>
    %151 = arith.maximumf %149, %150 : vector<1x96xf32>
    %c0_99 = arith.constant 0 : index
    %c0_100 = arith.constant 0 : index
    %152 = vector.load %arg8[%c0_99, %c0_100] : memref<1x96xf32, #tpu.memory_space<vmem>>, vector<1x96xf32>
    %cst_101 = arith.constant 9.99999974E-6 : f32
    %153 = vector.broadcast %cst_101 : f32 to vector<1x96xf32>
    %154 = arith.addf %151, %153 : vector<1x96xf32>
    %155 = math.rsqrt %154 : vector<1x96xf32>
    %156 = arith.mulf %152, %155 : vector<1x96xf32>
    %c0_102 = arith.constant 0 : index
    %c0_103 = arith.constant 0 : index
    %157 = vector.load %arg9[%c0_102, %c0_103] : memref<1x96xf32, #tpu.memory_space<vmem>>, vector<1x96xf32>
    %158 = arith.mulf %145, %156 : vector<1x96xf32>
    %159 = arith.subf %157, %158 : vector<1x96xf32>
    %160 = vector.broadcast %156 : vector<1x96xf32> to vector<12x96xf32>
    %161 = arith.mulf %107, %160 : vector<12x96xf32>
    %162 = vector.broadcast %159 : vector<1x96xf32> to vector<12x96xf32>
    %163 = arith.addf %161, %162 : vector<12x96xf32>
    %cst_104 = arith.constant 0.000000e+00 : f32
    %164 = vector.broadcast %cst_104 : f32 to vector<12x96xf32>
    %165 = arith.maximumf %163, %164 : vector<12x96xf32>
    %166 = vector.broadcast %156 : vector<1x96xf32> to vector<12x96xf32>
    %167 = arith.mulf %127, %166 : vector<12x96xf32>
    %168 = vector.broadcast %159 : vector<1x96xf32> to vector<12x96xf32>
    %169 = arith.addf %167, %168 : vector<12x96xf32>
    %cst_105 = arith.constant 0.000000e+00 : f32
    %170 = vector.broadcast %cst_105 : f32 to vector<12x96xf32>
    %171 = arith.maximumf %169, %170 : vector<12x96xf32>
    %172 = vector.extract_strided_slice %165 {offsets = [0, 0], sizes = [10, 96], strides = [1, 1]} : vector<12x96xf32> to vector<10x96xf32>
    %173 = arith.truncf %172 : vector<10x96xf32> to vector<10x96xbf16>
    %c0_106 = arith.constant 0 : index
    %c0_107 = arith.constant 0 : index
    %c0_108 = arith.constant 0 : index
    %174 = vector.load %arg11[%c0_106, %c0_107, %c0_108] : memref<3x96x80xbf16, #tpu.memory_space<vmem>>, vector<1x96x80xbf16>
    %175 = vector.shape_cast %174 : vector<1x96x80xbf16> to vector<96x80xbf16>
    %cst_109 = arith.constant dense<0.000000e+00> : vector<10x80xf32>
    %176 = tpu.matmul %173, %175, %cst_109 {dimension_numbers = #tpu.dot_dimension_numbers<[1], [0], [0], [1], [0, 0, 1, 1], [], []>} : vector<10x96xbf16>, vector<96x80xbf16>, vector<10x80xf32> -> vector<10x80xf32>
    %177 = vector.extract_strided_slice %165 {offsets = [1, 0], sizes = [10, 96], strides = [1, 1]} : vector<12x96xf32> to vector<10x96xf32>
    %178 = arith.truncf %177 : vector<10x96xf32> to vector<10x96xbf16>
    %c1_110 = arith.constant 1 : index
    %c0_111 = arith.constant 0 : index
    %c0_112 = arith.constant 0 : index
    %179 = vector.load %arg11[%c1_110, %c0_111, %c0_112] : memref<3x96x80xbf16, #tpu.memory_space<vmem>>, vector<1x96x80xbf16>
    %180 = vector.shape_cast %179 : vector<1x96x80xbf16> to vector<96x80xbf16>
    %cst_113 = arith.constant dense<0.000000e+00> : vector<10x80xf32>
    %181 = tpu.matmul %178, %180, %cst_113 {dimension_numbers = #tpu.dot_dimension_numbers<[1], [0], [0], [1], [0, 0, 1, 1], [], []>} : vector<10x96xbf16>, vector<96x80xbf16>, vector<10x80xf32> -> vector<10x80xf32>
    %182 = arith.addf %176, %181 : vector<10x80xf32>
    %183 = vector.extract_strided_slice %165 {offsets = [2, 0], sizes = [10, 96], strides = [1, 1]} : vector<12x96xf32> to vector<10x96xf32>
    %184 = arith.truncf %183 : vector<10x96xf32> to vector<10x96xbf16>
    %c2_114 = arith.constant 2 : index
    %c0_115 = arith.constant 0 : index
    %c0_116 = arith.constant 0 : index
    %185 = vector.load %arg11[%c2_114, %c0_115, %c0_116] : memref<3x96x80xbf16, #tpu.memory_space<vmem>>, vector<1x96x80xbf16>
    %186 = vector.shape_cast %185 : vector<1x96x80xbf16> to vector<96x80xbf16>
    %cst_117 = arith.constant dense<0.000000e+00> : vector<10x80xf32>
    %187 = tpu.matmul %184, %186, %cst_117 {dimension_numbers = #tpu.dot_dimension_numbers<[1], [0], [0], [1], [0, 0, 1, 1], [], []>} : vector<10x96xbf16>, vector<96x80xbf16>, vector<10x80xf32> -> vector<10x80xf32>
    %188 = arith.addf %182, %187 : vector<10x80xf32>
    %c0_118 = arith.constant 0 : index
    %c0_119 = arith.constant 0 : index
    %189 = vector.load %arg12[%c0_118, %c0_119] : memref<1x80xf32, #tpu.memory_space<vmem>>, vector<1x80xf32>
    %190 = vector.broadcast %189 : vector<1x80xf32> to vector<10x80xf32>
    %191 = arith.addf %188, %190 : vector<10x80xf32>
    %192 = vector.extract_strided_slice %171 {offsets = [0, 0], sizes = [10, 96], strides = [1, 1]} : vector<12x96xf32> to vector<10x96xf32>
    %193 = arith.truncf %192 : vector<10x96xf32> to vector<10x96xbf16>
    %c0_120 = arith.constant 0 : index
    %c0_121 = arith.constant 0 : index
    %c0_122 = arith.constant 0 : index
    %194 = vector.load %arg11[%c0_120, %c0_121, %c0_122] : memref<3x96x80xbf16, #tpu.memory_space<vmem>>, vector<1x96x80xbf16>
    %195 = vector.shape_cast %194 : vector<1x96x80xbf16> to vector<96x80xbf16>
    %cst_123 = arith.constant dense<0.000000e+00> : vector<10x80xf32>
    %196 = tpu.matmul %193, %195, %cst_123 {dimension_numbers = #tpu.dot_dimension_numbers<[1], [0], [0], [1], [0, 0, 1, 1], [], []>} : vector<10x96xbf16>, vector<96x80xbf16>, vector<10x80xf32> -> vector<10x80xf32>
    %197 = vector.extract_strided_slice %171 {offsets = [1, 0], sizes = [10, 96], strides = [1, 1]} : vector<12x96xf32> to vector<10x96xf32>
    %198 = arith.truncf %197 : vector<10x96xf32> to vector<10x96xbf16>
    %c1_124 = arith.constant 1 : index
    %c0_125 = arith.constant 0 : index
    %c0_126 = arith.constant 0 : index
    %199 = vector.load %arg11[%c1_124, %c0_125, %c0_126] : memref<3x96x80xbf16, #tpu.memory_space<vmem>>, vector<1x96x80xbf16>
    %200 = vector.shape_cast %199 : vector<1x96x80xbf16> to vector<96x80xbf16>
    %cst_127 = arith.constant dense<0.000000e+00> : vector<10x80xf32>
    %201 = tpu.matmul %198, %200, %cst_127 {dimension_numbers = #tpu.dot_dimension_numbers<[1], [0], [0], [1], [0, 0, 1, 1], [], []>} : vector<10x96xbf16>, vector<96x80xbf16>, vector<10x80xf32> -> vector<10x80xf32>
    %202 = arith.addf %196, %201 : vector<10x80xf32>
    %203 = vector.extract_strided_slice %171 {offsets = [2, 0], sizes = [10, 96], strides = [1, 1]} : vector<12x96xf32> to vector<10x96xf32>
    %204 = arith.truncf %203 : vector<10x96xf32> to vector<10x96xbf16>
    %c2_128 = arith.constant 2 : index
    %c0_129 = arith.constant 0 : index
    %c0_130 = arith.constant 0 : index
    %205 = vector.load %arg11[%c2_128, %c0_129, %c0_130] : memref<3x96x80xbf16, #tpu.memory_space<vmem>>, vector<1x96x80xbf16>
    %206 = vector.shape_cast %205 : vector<1x96x80xbf16> to vector<96x80xbf16>
    %cst_131 = arith.constant dense<0.000000e+00> : vector<10x80xf32>
    %207 = tpu.matmul %204, %206, %cst_131 {dimension_numbers = #tpu.dot_dimension_numbers<[1], [0], [0], [1], [0, 0, 1, 1], [], []>} : vector<10x96xbf16>, vector<96x80xbf16>, vector<10x80xf32> -> vector<10x80xf32>
    %208 = arith.addf %202, %207 : vector<10x80xf32>
    %c0_132 = arith.constant 0 : index
    %c0_133 = arith.constant 0 : index
    %209 = vector.load %arg12[%c0_132, %c0_133] : memref<1x80xf32, #tpu.memory_space<vmem>>, vector<1x80xf32>
    %210 = vector.broadcast %209 : vector<1x80xf32> to vector<10x80xf32>
    %211 = arith.addf %208, %210 : vector<10x80xf32>
    %c0_134 = arith.constant 0 : index
    %c0_135 = arith.constant 0 : index
    %212 = vector.load %arg15[%c0_134, %c0_135] : memref<80x80xf32, #tpu.memory_space<vmem>>, vector<80x80xf32>
    %cst_136 = arith.constant dense<0.000000e+00> : vector<10x80xf32>
    %213 = tpu.matmul %191, %212, %cst_136 {dimension_numbers = #tpu.dot_dimension_numbers<[1], [0], [0], [1], [0, 0, 1, 1], [], []>} : vector<10x80xf32>, vector<80x80xf32>, vector<10x80xf32> -> vector<10x80xf32>
    %214 = arith.mulf %191, %191 : vector<10x80xf32>
    %c0_137 = arith.constant 0 : index
    %c0_138 = arith.constant 0 : index
    %215 = vector.load %arg15[%c0_137, %c0_138] : memref<80x80xf32, #tpu.memory_space<vmem>>, vector<80x80xf32>
    %cst_139 = arith.constant dense<0.000000e+00> : vector<10x80xf32>
    %216 = tpu.matmul %214, %215, %cst_139 {dimension_numbers = #tpu.dot_dimension_numbers<[1], [0], [0], [1], [0, 0, 1, 1], [], []>} : vector<10x80xf32>, vector<80x80xf32>, vector<10x80xf32> -> vector<10x80xf32>
    %c0_140 = arith.constant 0 : index
    %c0_141 = arith.constant 0 : index
    %217 = vector.load %arg15[%c0_140, %c0_141] : memref<80x80xf32, #tpu.memory_space<vmem>>, vector<80x80xf32>
    %cst_142 = arith.constant dense<0.000000e+00> : vector<10x80xf32>
    %218 = tpu.matmul %211, %217, %cst_142 {dimension_numbers = #tpu.dot_dimension_numbers<[1], [0], [0], [1], [0, 0, 1, 1], [], []>} : vector<10x80xf32>, vector<80x80xf32>, vector<10x80xf32> -> vector<10x80xf32>
    %219 = arith.mulf %211, %211 : vector<10x80xf32>
    %c0_143 = arith.constant 0 : index
    %c0_144 = arith.constant 0 : index
    %220 = vector.load %arg15[%c0_143, %c0_144] : memref<80x80xf32, #tpu.memory_space<vmem>>, vector<80x80xf32>
    %cst_145 = arith.constant dense<0.000000e+00> : vector<10x80xf32>
    %221 = tpu.matmul %219, %220, %cst_145 {dimension_numbers = #tpu.dot_dimension_numbers<[1], [0], [0], [1], [0, 0, 1, 1], [], []>} : vector<10x80xf32>, vector<80x80xf32>, vector<10x80xf32> -> vector<10x80xf32>
    %222 = arith.addf %213, %218 : vector<10x80xf32>
    %223 = arith.addf %216, %221 : vector<10x80xf32>
    %cst_146 = arith.constant dense<0.000000e+00> : vector<80xf32>
    %224 = vector.multi_reduction <add>, %222, %cst_146 [0] : vector<10x80xf32> to vector<80xf32>
    %225 = vector.shape_cast %224 : vector<80xf32> to vector<1x80xf32>
    %cst_147 = arith.constant dense<0.000000e+00> : vector<80xf32>
    %226 = vector.multi_reduction <add>, %223, %cst_147 [0] : vector<10x80xf32> to vector<80xf32>
    %227 = vector.shape_cast %226 : vector<80xf32> to vector<1x80xf32>
    %cst_148 = arith.constant 5.000000e-03 : f32
    %228 = vector.broadcast %cst_148 : f32 to vector<1x80xf32>
    %229 = arith.mulf %225, %228 : vector<1x80xf32>
    %cst_149 = arith.constant 5.000000e-03 : f32
    %230 = vector.broadcast %cst_149 : f32 to vector<1x80xf32>
    %231 = arith.mulf %227, %230 : vector<1x80xf32>
    %232 = arith.mulf %229, %229 : vector<1x80xf32>
    %233 = arith.subf %231, %232 : vector<1x80xf32>
    %cst_150 = arith.constant 0.000000e+00 : f32
    %234 = vector.broadcast %cst_150 : f32 to vector<1x80xf32>
    %235 = arith.maximumf %233, %234 : vector<1x80xf32>
    %c0_151 = arith.constant 0 : index
    %c0_152 = arith.constant 0 : index
    %236 = vector.load %arg13[%c0_151, %c0_152] : memref<1x80xf32, #tpu.memory_space<vmem>>, vector<1x80xf32>
    %cst_153 = arith.constant 9.99999974E-6 : f32
    %237 = vector.broadcast %cst_153 : f32 to vector<1x80xf32>
    %238 = arith.addf %235, %237 : vector<1x80xf32>
    %239 = math.rsqrt %238 : vector<1x80xf32>
    %240 = arith.mulf %236, %239 : vector<1x80xf32>
    %c0_154 = arith.constant 0 : index
    %c0_155 = arith.constant 0 : index
    %241 = vector.load %arg14[%c0_154, %c0_155] : memref<1x80xf32, #tpu.memory_space<vmem>>, vector<1x80xf32>
    %242 = arith.mulf %229, %240 : vector<1x80xf32>
    %243 = arith.subf %241, %242 : vector<1x80xf32>
    %244 = vector.broadcast %240 : vector<1x80xf32> to vector<10x80xf32>
    %245 = arith.mulf %191, %244 : vector<10x80xf32>
    %246 = vector.broadcast %243 : vector<1x80xf32> to vector<10x80xf32>
    %247 = arith.addf %245, %246 : vector<10x80xf32>
    %cst_156 = arith.constant 0.000000e+00 : f32
    %248 = vector.broadcast %cst_156 : f32 to vector<10x80xf32>
    %249 = arith.maximumf %247, %248 : vector<10x80xf32>
    %250 = vector.broadcast %240 : vector<1x80xf32> to vector<10x80xf32>
    %251 = arith.mulf %211, %250 : vector<10x80xf32>
    %252 = vector.broadcast %243 : vector<1x80xf32> to vector<10x80xf32>
    %253 = arith.addf %251, %252 : vector<10x80xf32>
    %cst_157 = arith.constant 0.000000e+00 : f32
    %254 = vector.broadcast %cst_157 : f32 to vector<10x80xf32>
    %255 = arith.maximumf %253, %254 : vector<10x80xf32>
    %c0_158 = arith.constant 0 : index
    %c0_159 = arith.constant 0 : index
    %c0_160 = arith.constant 0 : index
    %256 = vector.load %arg16[%c0_158, %c0_159, %c0_160] : memref<2x10x80xf32, #tpu.memory_space<vmem>>, vector<1x10x80xf32>
    %257 = vector.shape_cast %256 : vector<1x10x80xf32> to vector<10x80xf32>
    %258 = vector.shape_cast %249 : vector<10x80xf32> to vector<1x10x80xf32>
    tpu.vector_store %arg16[%c0_158, %c0_159, %c0_160], %258 {strides = array<i32>} : memref<2x10x80xf32, #tpu.memory_space<vmem>>, vector<1x10x80xf32>,
    %c1_161 = arith.constant 1 : index
    %c0_162 = arith.constant 0 : index
    %c0_163 = arith.constant 0 : index
    %259 = vector.load %arg16[%c1_161, %c0_162, %c0_163] : memref<2x10x80xf32, #tpu.memory_space<vmem>>, vector<1x10x80xf32>
    %260 = vector.shape_cast %259 : vector<1x10x80xf32> to vector<10x80xf32>
    %261 = vector.shape_cast %255 : vector<10x80xf32> to vector<1x10x80xf32>
    tpu.vector_store %arg16[%c1_161, %c0_162, %c0_163], %261 {strides = array<i32>} : memref<2x10x80xf32, #tpu.memory_space<vmem>>, vector<1x10x80xf32>,
    return
  }
}

</mosaic_0001>

<bundles_post_ra>
// kernel: forward.1
= control target key start
LH: loop header
LB: loop body
LE: loop exit
PB: predicated region body
PF: predicated region fallthrough
CT: control target
= control target key end

     0   :  { %v3977_v0 = vmov 0.0   ;;  %vm3978_vm0 = vmmov 0   ;;  %vm108_vm1 = vcmask 523264   ;;  %vm471_vm2 = vcmask 916480   ;;  %s4950_s1 = inlined_call_operand.vmem [shape: bf16[3,64,112], index: 1, kind: input, shape index: {}]   ;;  %s4951_s0 = inlined_call_operand.vmem [shape: f32[2,16,64], index: 0, kind: input, shape index: {}]   ;;  %s4952_s5 = inlined_call_operand.vmem [shape: f32[112,112], index: 5, kind: input, shape index: {}]   ;;  %s4953_s2 = inlined_call_operand.vmem [shape: f32[1,112], index: 2, kind: input, shape index: {}]   ;;  %s4954_s6 = inlined_call_operand.vmem [shape: bf16[3,112,96], index: 6, kind: input, shape index: {}]   ;;  %s4955_s3 = inlined_call_operand.vmem [shape: f32[1,112], index: 3, kind: input, shape index: {}]   ;;  %s4956_s4 = inlined_call_operand.vmem [shape: f32[1,112], index: 4, kind: input, shape index: {}]   ;;  %s4957_s10 = inlined_call_operand.vmem [shape: f32[96,96], index: 10, kind: input, shape index: {}]   ;;  %s4958_s7 = inlined_call_operand.vmem [shape: f32[1,96], index: 7, kind: input, shape index: {}]   ;;  %s4959_s11 = inlined_call_operand.vmem [shape: bf16[3,96,80], index: 11, kind: input, shape index: {}]   ;;  %s4960_s8 = inlined_call_operand.vmem [shape: f32[1,96], index: 8, kind: input, shape index: {}]   ;;  %s4961_s9 = inlined_call_operand.vmem [shape: f32[1,96], index: 9, kind: input, shape index: {}]   ;;  %s4962_s15 = inlined_call_operand.vmem [shape: f32[80,80], index: 15, kind: input, shape index: {}]   ;;  %s4963_s12 = inlined_call_operand.vmem [shape: f32[1,80], index: 12, kind: input, shape index: {}]   ;;  %s4964_s13 = inlined_call_operand.vmem [shape: f32[1,80], index: 13, kind: input, shape index: {}]   ;;  %s4965_s14 = inlined_call_operand.vmem [shape: f32[1,80], index: 14, kind: input, shape index: {}]   ;;  %s4966_s16 = inlined_call_operand.vmem [shape: f32[2,10,80], index: 16, kind: output, shape index: {}]  }
   0x1   :  { %4968 = sst [smem:[#allocation2_spill]] %s4950_s1  ;;  %3018 = vmatprep.subr.bf16.mxu0 %v3977_v0  ;;  %3030 = vmatprep.subr.bf16.mxu1 %v3977_v0  ;;  %v54_v7 = vld [vmem:[%s4951_s0] sm:$0xff]  ;;  %v55_v8 = vld [vmem:[%s4951_s0 + $0x8] sm:$0xff]  ;;  %v2562_v17 = vld [vmem:[%s4951_s0 + $0x10] sm:$0xff]  ;;  %vm799_vm3 = vcmask 914432   ;;  %vm1334_vm4 = vcmask 785408  }
   0x2   :  { %s4969_s23 = sld [smem:[#allocation2_spill]]  ;;  %3026 = vmatprep.mubr.msk.bf16.mxu0 %vm3978_vm0, %v3977_v0  ;;  %3038 = vmatprep.mubr.msk.bf16.mxu1 %vm3978_vm0, %v3977_v0  ;;  %v59_v9 = vpack.c.bf16 %v55_v8, %v54_v7  ;;  %v2563_v18 = vld [vmem:[%s4951_s0 + $0x18] sm:$0xff]  ;;  %v455_v29 = vld [vmem:[%s4952_s5] sm:$0xff]  ;;  %v456_v30 = vld [vmem:[%s4952_s5 + $0x8] sm:$0xff]  ;;  %vm1662_vm5 = vcmask 781312   ;;  %vm2171_vm6 = vcmask 654336  }
   0x3   :  { %v310_v20 = vpack.c.bf16 %v2563_v18, %v2562_v17  ;;  %v4172_v31 = vpack.c.bf16 %v456_v30, %v455_v29  ;;  %v457_v32 = vld [vmem:[%s4952_s5 + $0x10] sm:$0xff]  ;;  %v458_v33 = vld [vmem:[%s4952_s5 + $0x18] sm:$0xff]  ;;  %v459_v35 = vld [vmem:[%s4952_s5 + $0x20] sm:$0xff]  ;;  %vm2499_vm7 = vcmask 648192  }
   0x4   :  { %v78_v12 = vshrl.u32 %v59_v9, 16  ;;  %v80_v13 = vshll.u32 %v59_v9, 16  ;;  %v230_v26 = vrot.slane %v59_v9, 1  ;;  %v4184_v34 = vpack.c.bf16 %v458_v33, %v457_v32  ;;  %v460_v36 = vld [vmem:[%s4952_s5 + $0x28] sm:$0xff]  ;;  %v461_v38 = vld [vmem:[%s4952_s5 + $0x30] sm:$0xff]  ;;  %v462_v39 = vld [vmem:[%s4952_s5 + $0x38] sm:$0xff] }
   0x5   :  { %v314_v22 = vshll.u32 %v310_v20, 16  ;;  %v312_v24 = vshrl.u32 %v310_v20, 16  ;;  %v406_v28 = vrot.slane %v310_v20, 1  ;;  %v4196_v37 = vpack.c.bf16 %v460_v36, %v459_v35  ;;  %v463_v41 = vld [vmem:[%s4952_s5 + $0x40] sm:$0xff]  ;;  %v464_v42 = vld [vmem:[%s4952_s5 + $0x48] sm:$0xff]  ;;  %v465_v44 = vld [vmem:[%s4952_s5 + $0x50] sm:$0xff] }
   0x6   :  { %v82_v14 = vrot.slane %v80_v13, 1  ;;  %v4208_v40 = vpack.c.bf16 %v462_v39, %v461_v38  ;;  %v4216_v43 = vpack.c.bf16 %v464_v42, %v463_v41  ;;  %v466_v45 = vld [vmem:[%s4952_s5 + $0x58] sm:$0xff]  ;;  %v467_v47 = vld [vmem:[%s4952_s5 + $0x60] sm:$0xff]  ;;  %v468_v48 = vld [vmem:[%s4952_s5 + $0x68] sm:$0xff] }
   0x7   :  { %v316_v25 = vrot.slane %v314_v22, 1  ;;  %v4232_v46 = vpack.c.bf16 %v466_v45, %v465_v44  ;;  %v4244_v49 = vpack.c.bf16 %v468_v48, %v467_v47  ;;  %v2595_v13 = vld [vmem:[%s4953_s2] ss:$0 sm:$0xff]  ;;  %v4325_v29 = vld [vmem:[%s4954_s6 + $0x8] sm:$0xff]   ;;  %v4331_v30 = vld [vmem:[%s4954_s6 + $0x38] sm:$0xff]  }
   0x8   :  { %v3920_v1 = vld [vmem:[%s4969_s23 + $0x20] sm:$0xff]   ;;  %v3922_v3 = vld [vmem:[%s4969_s23 + $0x28] sm:$0xff]   ;;  %v3924_v5 = vld [vmem:[%s4969_s23 + $0x30] sm:$0xff]   ;;  %v83_v16 = vor.u32 %v82_v14, %v78_v12 }
   0x9   :  { %v4072_v2 = vld [vmem:[%s4969_s23] sm:$0xff]   ;;  %3019 = vmatpush3.bf16.msra.mxu0 %v3920_v1  ;;  %v4086_v4 = vld [vmem:[%s4969_s23 + $0x8] sm:$0xff]   ;;  %v4097_v6 = vld [vmem:[%s4969_s23 + $0x10] sm:$0xff]   ;;  %v317_v27 = vor.u32 %v316_v25, %v312_v24 }
   0xa   :  { %3031 = vmatpush3.bf16.msra.mxu1 %v4072_v2  ;;  %3020 = vmatprep.subr.bf16.mxu0 %v3977_v0  ;;  %v3926_v10 = vld [vmem:[%s4969_s23 + $0x38] sm:$0xff]   ;;  %v3928_v15 = vld [vmem:[%s4969_s23 + $0x40] sm:$0xff]   ;;  %v3929_v19 = vld [vmem:[%s4969_s23 + $0x48] sm:$0xff]  }
   0xb   :  { %3032 = vmatprep.subr.bf16.mxu1 %v3977_v0  ;;  %v3927_v11 = vld [vmem:[%s4969_s23 + $0x18] sm:$0xff]   ;;  %v3930_v21 = vld [vmem:[%s4969_s23 + $0x50] sm:$0xff]   ;;  %v4345_v32 = vld [vmem:[%s4954_s6 + $0x40] sm:$0xff]  }
   0xc   :  { %v3931_v23 = vld [vmem:[%s4969_s23 + $0x58] sm:$0xff]   ;;  %v4366_v35 = vld [vmem:[%s4954_s6 + $0x20] sm:$0xff]   ;;  %v4373_v36 = vld [vmem:[%s4954_s6 + $0x50] sm:$0xff]  }
   0xd   :  { %3021 = vmatpush3.bf16.msra.mxu0 %v3922_v3  ;;  %v4352_v33 = vld [vmem:[%s4954_s6 + $0x18] sm:$0xff]   ;;  %v4392_v39 = vld [vmem:[%s4954_s6 + $0x30] sm:$0xff]   ;;  %v4409_v41 = vld [vmem:[%s4954_s6 + $0x68] sm:$0xff]  }
   0xe   :  { %3033 = vmatpush3.bf16.msra.mxu1 %v4086_v4  ;;  %3022 = vmatprep.subr.bf16.mxu0 %v3977_v0  ;;  %v4385_v38 = vld [vmem:[%s4954_s6 + $0x58] sm:$0xff]  }
   0xf   :  { %3034 = vmatprep.subr.bf16.mxu1 %v3977_v0 }
  0x11   :  { %3023 = vmatpush3.bf16.msra.mxu0 %v3924_v5 }
  0x12   :  { %3035 = vmatpush3.bf16.msra.mxu1 %v4097_v6  ;;  %3024 = vmatprep.subr.bf16.mxu0 %v3977_v0 }
  0x13   :  { %3036 = vmatprep.subr.bf16.mxu1 %v3977_v0 }
  0x15   :  { %3025 = vmatpush3.bf16.msra.mxu0 %v3926_v10 }
  0x16   :  { %3037 = vmatpush3.bf16.msra.mxu1 %v3927_v11  ;;  %3042 = vmatprep.subr.bf16.mxu0 %v3977_v0 }
  0x17   :  { %3054 = vmatprep.subr.bf16.mxu1 %v3977_v0 }
  0x18   :  { %3027 = vmatmul.mubr.msk.bf16.vlgmr.msra.gmra.mrb[0].mxu0 %vm108_vm1, %v83_v16 }
  0x19   :  { %3039 = vmatmul.mubr.msk.bf16.vlgmr.msra.gmra.mrb[0].mxu1 %vm108_vm1, %v59_v9  ;;  %3043 = vmatpush3.bf16.msra.mxu0 %v3928_v15 }
  0x1a   :  { %3055 = vmatpush3.bf16.msra.mxu1 %v3920_v1  ;;  %3044 = vmatprep.subr.bf16.mxu0 %v3977_v0 }
  0x1b   :  { %3056 = vmatprep.subr.bf16.mxu1 %v3977_v0  ;;  %3050 = vmatprep.mubr.msk.bf16.mxu0 %vm3978_vm0, %v3977_v0 }
  0x1c   :  { %3062 = vmatprep.mubr.msk.bf16.mxu1 %vm3978_vm0, %v3977_v0 }
  0x1d   :  { %3045 = vmatpush3.bf16.msra.mxu0 %v3929_v19 }
  0x1e   :  { %3057 = vmatpush3.bf16.msra.mxu1 %v3922_v3  ;;  %3046 = vmatprep.subr.bf16.mxu0 %v3977_v0 }
  0x1f   :  { %3058 = vmatprep.subr.bf16.mxu1 %v3977_v0 }
  0x21   :  { %3047 = vmatpush3.bf16.msra.mxu0 %v3930_v21 }
  0x22   :  { %3059 = vmatpush3.bf16.msra.mxu1 %v3924_v5  ;;  %3048 = vmatprep.subr.bf16.mxu0 %v3977_v0 }
  0x23   :  { %3060 = vmatprep.subr.bf16.mxu1 %v3977_v0 }
  0x25   :  { %3049 = vmatpush3.bf16.msra.mxu0 %v3931_v23 }
  0x26   :  { %3061 = vmatpush3.bf16.msra.mxu1 %v3926_v10  ;;  %3066 = vmatprep.subr.bf16.mxu0 %v3977_v0 }
  0x27   :  { %3078 = vmatprep.subr.bf16.mxu1 %v3977_v0 }
  0x28   :  { %3051 = vmatmul.mubr.msk.bf16.vlgmr.msra.gmra.mrb[4].mxu0 %vm108_vm1, %v230_v26 }
  0x29   :  { %3063 = vmatmul.mubr.msk.bf16.vlgmr.msra.gmra.mrb[4].mxu1 %vm108_vm1, %v317_v27  ;;  %3067 = vmatpush3.bf16.msra.mxu0 %v4072_v2 }
  0x2a   :  { %3079 = vmatpush3.bf16.msra.mxu1 %v3928_v15  ;;  %3068 = vmatprep.subr.bf16.mxu0 %v3977_v0 }
  0x2b   :  { %3080 = vmatprep.subr.bf16.mxu1 %v3977_v0  ;;  %3074 = vmatprep.mubr.msk.bf16.mxu0 %vm3978_vm0, %v3977_v0 }
  0x2c   :  { %3086 = vmatprep.mubr.msk.bf16.mxu1 %vm3978_vm0, %v3977_v0 }
  0x2d   :  { %3069 = vmatpush3.bf16.msra.mxu0 %v4086_v4 }
  0x2e   :  { %3081 = vmatpush3.bf16.msra.mxu1 %v3929_v19  ;;  %3070 = vmatprep.subr.bf16.mxu0 %v3977_v0 }
  0x2f   :  { %3082 = vmatprep.subr.bf16.mxu1 %v3977_v0 }
  0x31   :  { %3071 = vmatpush3.bf16.msra.mxu0 %v4097_v6 }
  0x32   :  { %3083 = vmatpush3.bf16.msra.mxu1 %v3930_v21  ;;  %3072 = vmatprep.subr.bf16.mxu0 %v3977_v0 }
  0x33   :  { %3084 = vmatprep.subr.bf16.mxu1 %v3977_v0 }
  0x35   :  { %3073 = vmatpush3.bf16.msra.mxu0 %v3927_v11 }
  0x36   :  { %3085 = vmatpush3.bf16.msra.mxu1 %v3931_v23  ;;  %3619 = vmatprep.subr.bf16.mxu0 %v4172_v31 }
  0x37   :  { %3647 = vmatprep.subr.bf16.mxu1 %v4172_v31 }
  0x38   :  { %3075 = vmatmul.mubr.msk.bf16.vlgmr.msra.gmra.mrb[8].mxu0 %vm108_vm1, %v310_v20 }
  0x39   :  { %3087 = vmatmul.mubr.msk.bf16.vlgmr.msra.gmra.mrb[8].mxu1 %vm108_vm1, %v406_v28  ;;  %3621 = vmatpush3.bf16.msra.mxu0 %v4172_v31  ;;  %v4318_v28 = vld [vmem:[%s4954_s6] sm:$0xff]  }
  0x3a   :  { %3649 = vmatpush3.bf16.msra.mxu1 %v4172_v31  ;;  %3623 = vmatprep.subr.bf16.mxu0 %v4184_v34 }
  0x3b   :  { %3651 = vmatprep.subr.bf16.mxu1 %v4184_v34 }
  0x3d   :  { %3625 = vmatpush3.bf16.msra.mxu0 %v4184_v34 }
  0x3e   :  { %3653 = vmatpush3.bf16.msra.mxu1 %v4184_v34  ;;  %3627 = vmatprep.subr.bf16.mxu0 %v4196_v37 }
  0x3f   :  { %3655 = vmatprep.subr.bf16.mxu1 %v4196_v37 }
  0x41   :  { %3629 = vmatpush3.bf16.msra.mxu0 %v4196_v37 }
  0x42   :  { %3657 = vmatpush3.bf16.msra.mxu1 %v4196_v37  ;;  %3631 = vmatprep.subr.bf16.mxu0 %v4208_v40 }
  0x43   :  { %3659 = vmatprep.subr.bf16.mxu1 %v4208_v40 }
  0x45   :  { %3633 = vmatpush3.bf16.msra.mxu0 %v4208_v40 }
  0x46   :  { %3661 = vmatpush3.bf16.msra.mxu1 %v4208_v40  ;;  %3635 = vmatprep.subr.bf16.mxu0 %v4216_v43 }
  0x47   :  { %3663 = vmatprep.subr.bf16.mxu1 %v4216_v43 }
  0x49   :  { %3637 = vmatpush3.bf16.msra.mxu0 %v4216_v43 }
  0x4a   :  { %3665 = vmatpush3.bf16.msra.mxu1 %v4216_v43  ;;  %3639 = vmatprep.subr.bf16.mxu0 %v4232_v46 }
  0x4b   :  { %3667 = vmatprep.subr.bf16.mxu1 %v4232_v46 }
  0x4d   :  { %3641 = vmatpush3.bf16.msra.mxu0 %v4232_v46 }
  0x4e   :  { %3669 = vmatpush3.bf16.msra.mxu1 %v4232_v46  ;;  %3643 = vmatprep.subr.bf16.mxu0 %v4244_v49 }
  0x4f   :  { %3671 = vmatprep.subr.bf16.mxu1 %v4244_v49 }
  0x51   :  { %3645 = vmatpush3.bf16.msra.mxu0 %v4244_v49 }
  0x52   :  { %3673 = vmatpush3.bf16.msra.mxu1 %v4244_v49  ;;  %3675 = vmatprep.subr.bf16.mxu0 %v4172_v31 }
  0x53   :  { %3703 = vmatprep.subr.bf16.mxu1 %v4172_v31 }
  0xeb   :  { %v146_v50 = vpop.f32.mrb[0].mxu0 }
  0xec   :  { %v213_v51 = vpop.f32.mrb[0].mxu1  ;;  %v3028_v52 = vpop.f32.mrb[1].mxu0 }
  0xed   :  { %v214_v53 = vadd.f32 %v213_v51, %v146_v50  ;;  %v3040_v54 = vpop.f32.mrb[1].mxu1  ;;  %v149_v55 = vpop.f32.mrb[2].mxu0 }
  0xee   :  { %v216_v56 = vpop.f32.mrb[2].mxu1  ;;  %v3029_v57 = vpop.f32.mrb[3].mxu0 }
  0xef   :  { %v217_v58 = vadd.f32 %v216_v56, %v149_v55  ;;  %v3041_v59 = vpop.f32.mrb[3].mxu1 }
  0xfb   :  { %v292_v60 = vpop.f32.mrb[4].mxu0 }
  0xfc   :  { %v299_v61 = vadd.f32 %v292_v60, %v214_v53  ;;  %v355_v62 = vpop.f32.mrb[4].mxu1  ;;  %v3052_v63 = vpop.f32.mrb[5].mxu0 }
  0xfd   :  { %v3064_v1 = vpop.f32.mrb[5].mxu1  ;;  %v295_v2 = vpop.f32.mrb[6].mxu0 }
  0xfe   :  { %v300_v3 = vadd.f32 %v295_v2, %v217_v58  ;;  %v358_v4 = vpop.f32.mrb[6].mxu1  ;;  %v3053_v5 = vpop.f32.mrb[7].mxu0  ;;  %v4257_v21 = vadd.f32 %v2595_v13, %v299_v61 }
  0xff   :  { %v3065_v6 = vpop.f32.mrb[7].mxu1 }
 0x100   :  { %v469_v25 = vmul.f32 %v4257_v21, %v4257_v21  ;;  %v4299_v26 = vadd.f32 %v2595_v13, %v300_v3 }
 0x102   :  { %v470_v27 = vmul.f32 %v4299_v26, %v4299_v26 }
 0x10b   :  { %v398_v7 = vpop.f32.mrb[8].mxu0 }
 0x10c   :  { %v399_v8 = vadd.f32 %v398_v7, %v355_v62  ;;  %v444_v9 = vpop.f32.mrb[8].mxu1  ;;  %v3076_v10 = vpop.f32.mrb[9].mxu0  ;;  %v830_v7 = vlaneseq }
 0x10d   :  { %v3088_v11 = vpop.f32.mrb[9].mxu1  ;;  %v401_v12 = vpop.f32.mrb[10].mxu0 }
 0x10e   :  { %v451_v14 = vadd.f32 %v444_v9, %v399_v8  ;;  %v402_v15 = vadd.f32 %v401_v12, %v358_v4  ;;  %v447_v16 = vpop.f32.mrb[10].mxu1  ;;  %v3077_v17 = vpop.f32.mrb[11].mxu0  ;;  %v831_v8 = vshrl.u32 %v830_v7, 7  ;;  %v822_v9 = vld [vmem:[%s4955_s3] sm:$0x1] }
 0x10f   :  { %v3089_v18 = vpop.f32.mrb[11].mxu1 }
 0x110   :  { %v4255_v19 = vadd.f32 %v2595_v13, %v451_v14  ;;  %v452_v20 = vadd.f32 %v447_v16, %v402_v15  ;;  %v4418_v10 = vsub.s32 0, %v831_v8 }
 0x112   :  { %v553_v22 = vmul.f32 %v4255_v19, %v4255_v19  ;;  %v4261_v23 = vadd.f32 %v2595_v13, %v452_v20  ;;  %3118 = vmatprep.mubr.msk.f32.mxu0 %vm471_vm2, %v4255_v19  ;;  %v826_v13 = vld [vmem:[%s4956_s4] sm:$0x1] }
 0x114   :  { %v554_v24 = vmul.f32 %v4261_v23, %v4261_v23  ;;  %3119 = vmatmul.mubr.msk.f32.vlgmr.msra.gmra.mrb[12].mxu0 %vm471_vm2, %v4261_v23  ;;  %3149 = vmatprep.mubr.msk.f32.mxu1 %vm471_vm2, %v553_v22 }
 0x115   :  { %3677 = vmatpush3.bf16.msra.mxu0 %v4172_v31  ;;  %3180 = vmatprep.mubr.msk.f32.mxu0 %vm471_vm2, %v4257_v21 }
 0x116   :  { %3150 = vmatmul.mubr.msk.f32.vlgmr.msra.gmra.mrb[12].mxu1 %vm471_vm2, %v554_v24  ;;  %3679 = vmatprep.subr.bf16.mxu0 %v4184_v34 }
 0x117   :  { %3705 = vmatpush3.bf16.msra.mxu1 %v4172_v31  ;;  %3211 = vmatprep.mubr.msk.f32.mxu1 %vm471_vm2, %v469_v25  ;;  %v4338_v31 = vld [vmem:[%s4954_s6 + $0x10] sm:$0xff]  }
 0x118   :  { %3707 = vmatprep.subr.bf16.mxu1 %v4184_v34 }
 0x119   :  { %3681 = vmatpush3.bf16.msra.mxu0 %v4184_v34 }
 0x11a   :  { %3683 = vmatprep.subr.bf16.mxu0 %v4196_v37 }
 0x11b   :  { %3709 = vmatpush3.bf16.msra.mxu1 %v4184_v34  ;;  %v4359_v34 = vld [vmem:[%s4954_s6 + $0x48] sm:$0xff]  }
 0x11c   :  { %3711 = vmatprep.subr.bf16.mxu1 %v4196_v37 }
 0x11d   :  { %3685 = vmatpush3.bf16.msra.mxu0 %v4196_v37 }
 0x11e   :  { %3687 = vmatprep.subr.bf16.mxu0 %v4208_v40 }
 0x11f   :  { %3713 = vmatpush3.bf16.msra.mxu1 %v4196_v37  ;;  %v4378_v37 = vld [vmem:[%s4954_s6 + $0x28] sm:$0xff]  }
 0x120   :  { %3715 = vmatprep.subr.bf16.mxu1 %v4208_v40 }
 0x121   :  { %3689 = vmatpush3.bf16.msra.mxu0 %v4208_v40 }
 0x122   :  { %3691 = vmatprep.subr.bf16.mxu0 %v4216_v43 }
 0x123   :  { %3717 = vmatpush3.bf16.msra.mxu1 %v4208_v40  ;;  %v4399_v40 = vld [vmem:[%s4954_s6 + $0x60] sm:$0xff]  }
 0x124   :  { %3719 = vmatprep.subr.bf16.mxu1 %v4216_v43 }
 0x125   :  { %3693 = vmatpush3.bf16.msra.mxu0 %v4216_v43 }
 0x126   :  { %3695 = vmatprep.subr.bf16.mxu0 %v4232_v46 }
 0x127   :  { %3721 = vmatpush3.bf16.msra.mxu1 %v4216_v43 }
 0x128   :  { %3723 = vmatprep.subr.bf16.mxu1 %v4232_v46 }
 0x129   :  { %3697 = vmatpush3.bf16.msra.mxu0 %v4232_v46 }
 0x12a   :  { %3699 = vmatprep.subr.bf16.mxu0 %v4244_v49 }
 0x12b   :  { %3725 = vmatpush3.bf16.msra.mxu1 %v4232_v46 }
 0x12c   :  { %3727 = vmatprep.subr.bf16.mxu1 %v4244_v49 }
 0x12d   :  { %3701 = vmatpush3.bf16.msra.mxu0 %v4244_v49 }
 0x12e   :  { %3214 = vmatprep.subr.bf16.mxu0 %v3977_v0 }
 0x12f   :  { %3729 = vmatpush3.bf16.msra.mxu1 %v4244_v49 }
 0x130   :  { %3181 = vmatmul.mubr.msk.f32.vlgmr.msra.gmra.mrb[12].mxu0 %vm471_vm2, %v4299_v26  ;;  %3232 = vmatprep.subr.bf16.mxu1 %v3977_v0 }
 0x131   :  { %3228 = vmatprep.mubr.msk.bf16.mxu0 %vm3978_vm0, %v3977_v0  ;;  %3215 = vmatpush3.bf16.msra.mxu0 %v4331_v30 }
 0x132   :  { %3212 = vmatmul.mubr.msk.f32.vlgmr.msra.gmra.mrb[12].mxu1 %vm471_vm2, %v470_v27  ;;  %3216 = vmatprep.subr.bf16.mxu0 %v3977_v0 }
 0x133   :  { %3246 = vmatprep.mubr.msk.bf16.mxu1 %vm3978_vm0, %v3977_v0  ;;  %3233 = vmatpush3.bf16.msra.mxu1 %v4318_v28 }
 0x134   :  { %3234 = vmatprep.subr.bf16.mxu1 %v3977_v0 }
 0x135   :  { %3217 = vmatpush3.bf16.msra.mxu0 %v4345_v32 }
 0x136   :  { %3218 = vmatprep.subr.bf16.mxu0 %v3977_v0 }
 0x137   :  { %3235 = vmatpush3.bf16.msra.mxu1 %v4325_v29 }
 0x138   :  { %3236 = vmatprep.subr.bf16.mxu1 %v3977_v0 }
 0x139   :  { %3219 = vmatpush3.bf16.msra.mxu0 %v4359_v34 }
 0x13a   :  { %3220 = vmatprep.subr.bf16.mxu0 %v3977_v0 }
 0x13b   :  { %3237 = vmatpush3.bf16.msra.mxu1 %v4338_v31 }
 0x13c   :  { %3238 = vmatprep.subr.bf16.mxu1 %v3977_v0 }
 0x13d   :  { %3221 = vmatpush3.bf16.msra.mxu0 %v4373_v36 }
 0x13e   :  { %3222 = vmatprep.subr.bf16.mxu0 %v3977_v0 }
 0x13f   :  { %3239 = vmatpush3.bf16.msra.mxu1 %v4352_v33 }
 0x140   :  { %3240 = vmatprep.subr.bf16.mxu1 %v3977_v0 }
 0x141   :  { %3223 = vmatpush3.bf16.msra.mxu0 %v4385_v38 }
 0x142   :  { %3224 = vmatprep.subr.bf16.mxu0 %v3977_v0 }
 0x143   :  { %3241 = vmatpush3.bf16.msra.mxu1 %v4366_v35 }
 0x144   :  { %3242 = vmatprep.subr.bf16.mxu1 %v3977_v0 }
 0x145   :  { %3225 = vmatpush3.bf16.msra.mxu0 %v4399_v40 }
 0x146   :  { %3226 = vmatprep.subr.bf16.mxu0 %v3977_v0 }
 0x147   :  { %3243 = vmatpush3.bf16.msra.mxu1 %v4378_v37 }
 0x148   :  { %3244 = vmatprep.subr.bf16.mxu1 %v3977_v0 }
 0x149   :  { %3227 = vmatpush3.bf16.msra.mxu0 %v4409_v41 }
 0x14a   :  { %3250 = vmatprep.subr.bf16.mxu0 %v3977_v0 }
 0x14b   :  { %3245 = vmatpush3.bf16.msra.mxu1 %v4392_v39 }
 0x14c   :  { %3268 = vmatprep.subr.bf16.mxu1 %v3977_v0 }
 0x203   :  { %v3182_v42 = vpop.f32.mrb[12].mxu0 }
 0x204   :  { %v800_v43 = vsel %vm799_vm3, %v3182_v42, 0.0  ;;  %v708_v44 = vpop.f32.mrb[13].mxu0 }
 0x205   :  { %v798_v45 = vsel %vm471_vm2, %v708_v44, 0.0  ;;  %v3213_v46 = vpop.f32.mrb[12].mxu1 }
 0x206   :  { %v801_v47 = vadd.f32 %v800_v43, %v798_v45  ;;  %v809_v48 = vsel %vm799_vm3, %v3213_v46, 0.0  ;;  %v789_v49 = vpop.f32.mrb[13].mxu1 }
 0x207   :  { %v808_v50 = vsel %vm471_vm2, %v789_v49, 0.0 }
 0x208   :  { %v802_v51 = vrot.slane %v801_v47, 4  ;;  %v810_v52 = vadd.f32 %v809_v48, %v808_v50 }
 0x20a   :  { %v803_v53 = vadd.f32 %v802_v51, %v801_v47  ;;  %v811_v54 = vrot.slane %v810_v52, 4  ;;  %v3949_v51 = vld [vmem:[%s4954_s6 + $0x88] sm:$0xff]  }
 0x20c   :  { %v804_v55 = vrot.slane %v803_v53, 2  ;;  %v812_v56 = vadd.f32 %v811_v54, %v810_v52 }
 0x20e   :  { %v805_v57 = vadd.f32 %v804_v55, %v803_v53  ;;  %v813_v58 = vrot.slane %v812_v56, 2  ;;  %v1324_v55 = vld [vmem:[%s4957_s10 + $0x20] sm:$0xff] }
 0x210   :  { %v806_v59 = vrot.slane %v805_v57, 1  ;;  %v814_v60 = vadd.f32 %v813_v58, %v812_v56  ;;  %v1325_v56 = vld [vmem:[%s4957_s10 + $0x28] sm:$0xff]  ;;  %v1326_v58 = vld [vmem:[%s4957_s10 + $0x30] sm:$0xff] }
 0x212   :  { %v807_v61 = vadd.f32 %v806_v59, %v805_v57  ;;  %v815_v62 = vrot.slane %v814_v60, 1  ;;  %v4538_v57 = vpack.c.bf16 %v1325_v56, %v1324_v55  ;;  %v1327_v59 = vld [vmem:[%s4957_s10 + $0x38] sm:$0xff]  ;;  %v4706_v55 = vld [vmem:[%s4959_s11 + $0x28] sm:$0xff]   ;;  %v4713_v56 = vld [vmem:[%s4959_s11 + $0x50] sm:$0xff]  }
 0x214   :  { %v817_v63 = vmul.f32 0.0025510204, %v807_v61  ;;  %v816_v1 = vadd.f32 %v815_v62, %v814_v60  ;;  %v4552_v60 = vpack.c.bf16 %v1327_v59, %v1326_v58  ;;  %v1328_v61 = vld [vmem:[%s4957_s10 + $0x40] sm:$0xff]  ;;  %v1329_v62 = vld [vmem:[%s4957_s10 + $0x48] sm:$0xff] }
 0x216   :  { %v819_v2 = vmul.f32 %v817_v63, %v817_v63  ;;  %v818_v3 = vmul.f32 0.0025510204, %v816_v1  ;;  %v1330_v1 = vld [vmem:[%s4957_s10 + $0x50] sm:$0xff] }
 0x218   :  { %v820_v4 = vsub.f32 %v818_v3, %v819_v2  ;;  %v1331_v2 = vld [vmem:[%s4957_s10 + $0x58] sm:$0xff] }
 0x219   :  { %v4576_v3 = vpack.c.bf16 %v1331_v2, %v1330_v1 }
 0x21a   :  { %v821_v5 = vmax.f32 %v820_v4, 0.0 }
 0x21c   :  { %v823_v6 = vadd.f32 1e-05, %v821_v5 }
 0x21e   :  { %3971 = vrsqrt.f32 %v823_v6 }
 0x228   :  { %v3972_v11 = vpop.eup %3971 }
 0x229   :  { %v825_v12 = vmul.f32 %v3972_v11, %v822_v9 }
 0x22b   :  { %v827_v14 = vmul.f32 %v825_v12, %v817_v63  ;;  %v833_v15 = vrot.slane %v825_v12, %v4418_v10  ;;  %v4564_v63 = vpack.c.bf16 %v1329_v62, %v1328_v61 }
 0x22d   :  { %v828_v16 = vsub.f32 %v826_v13, %v827_v14  ;;  %v835_v17 = vmul.f32 %v833_v15, %v4257_v21  ;;  %v836_v18 = vmul.f32 %v833_v15, %v4299_v26  ;;  %v847_v22 = vmul.f32 %v833_v15, %v4255_v19  ;;  %v3946_v26 = vld [vmem:[%s4954_s6 + $0x70] sm:$0xff]  }
 0x22e   :  { %v848_v24 = vmul.f32 %v833_v15, %v4261_v23 }
 0x22f   :  { %v841_v20 = vrot.slane %v828_v16, %v4418_v10 }
 0x231   :  { %v843_v25 = vadd.f32 %v841_v20, %v835_v17  ;;  %v844_v27 = vadd.f32 %v841_v20, %v836_v18  ;;  %v849_v42 = vadd.f32 %v847_v22, %v841_v20  ;;  %v850_v43 = vadd.f32 %v848_v24, %v841_v20 }
 0x233   :  { %v845_v44 = vmax.f32 %v843_v25, 0.0  ;;  %v846_v45 = vmax.f32 %v844_v27, 0.0  ;;  %v851_v46 = vmax.f32 %v849_v42, 0.0  ;;  %v852_v47 = vmax.f32 %v850_v43, 0.0 }
 0x235   :  { %v853_v48 = vpack.c.bf16 %v846_v45, %v845_v44  ;;  %v4429_v49 = vpack.c.bf16 %v852_v47, %v851_v46 }
 0x237   :  { %3247 = vmatmul.mubr.msk.bf16.vlgmr.msra.gmra.mrb[16].mxu1 %vm471_vm2, %v853_v48  ;;  %v886_v21 = vshll.u32 %v853_v48, 16  ;;  %v884_v19 = vshrl.u32 %v853_v48, 16  ;;  %v1177_v53 = vshrl.u32 %v4429_v49, 16 }
 0x238   :  { %3269 = vmatpush3.bf16.msra.mxu1 %v4331_v30  ;;  %3282 = vmatprep.mubr.msk.bf16.mxu1 %vm3978_vm0, %v3977_v0  ;;  %v3947_v30 = vld [vmem:[%s4954_s6 + $0x78] sm:$0xff]  }
 0x239   :  { %3270 = vmatprep.subr.bf16.mxu1 %v3977_v0  ;;  %v888_v23 = vrot.slane %v886_v21, 1 }
 0x23b   :  { %v889_v50 = vor.u32 %v888_v23, %v884_v19  ;;  %v2659_v19 = vld [vmem:[%s4958_s7] ss:$0 sm:$0xff] }
 0x23c   :  { %3271 = vmatpush3.bf16.msra.mxu1 %v4345_v32  ;;  %v3948_v32 = vld [vmem:[%s4954_s6 + $0x80] sm:$0xff]  }
 0x23d   :  { %3229 = vmatmul.mubr.msk.bf16.vlgmr.msra.gmra.mrb[16].mxu0 %vm471_vm2, %v889_v50  ;;  %3272 = vmatprep.subr.bf16.mxu1 %v3977_v0 }
 0x23e   :  { %3251 = vmatpush3.bf16.msra.mxu0 %v3946_v26  ;;  %3264 = vmatprep.mubr.msk.bf16.mxu0 %vm3978_vm0, %v3977_v0 }
 0x23f   :  { %3252 = vmatprep.subr.bf16.mxu0 %v3977_v0 }
 0x240   :  { %3273 = vmatpush3.bf16.msra.mxu1 %v4359_v34  ;;  %v1179_v34 = vshll.u32 %v4429_v49, 16 }
 0x241   :  { %3274 = vmatprep.subr.bf16.mxu1 %v3977_v0 }
 0x242   :  { %3253 = vmatpush3.bf16.msra.mxu0 %v3947_v30  ;;  %v1181_v52 = vrot.slane %v1179_v34, 1 }
 0x243   :  { %3254 = vmatprep.subr.bf16.mxu0 %v3977_v0 }
 0x244   :  { %3275 = vmatpush3.bf16.msra.mxu1 %v4373_v36  ;;  %v3950_v36 = vld [vmem:[%s4954_s6 + $0x90] sm:$0xff]   ;;  %v1182_v54 = vor.u32 %v1181_v52, %v1177_v53 }
 0x245   :  { %3276 = vmatprep.subr.bf16.mxu1 %v3977_v0 }
 0x246   :  { %3255 = vmatpush3.bf16.msra.mxu0 %v3948_v32 }
 0x247   :  { %3256 = vmatprep.subr.bf16.mxu0 %v3977_v0 }
 0x248   :  { %3277 = vmatpush3.bf16.msra.mxu1 %v4385_v38  ;;  %v3951_v38 = vld [vmem:[%s4954_s6 + $0x98] sm:$0xff]  }
 0x249   :  { %3278 = vmatprep.subr.bf16.mxu1 %v3977_v0 }
 0x24a   :  { %3257 = vmatpush3.bf16.msra.mxu0 %v3949_v51 }
 0x24b   :  { %3258 = vmatprep.subr.bf16.mxu0 %v3977_v0 }
 0x24c   :  { %3279 = vmatpush3.bf16.msra.mxu1 %v4399_v40  ;;  %v3952_v40 = vld [vmem:[%s4954_s6 + $0xa0] sm:$0xff]  }
 0x24d   :  { %3280 = vmatprep.subr.bf16.mxu1 %v3977_v0 }
 0x24e   :  { %3259 = vmatpush3.bf16.msra.mxu0 %v3950_v36 }
 0x24f   :  { %3260 = vmatprep.subr.bf16.mxu0 %v3977_v0 }
 0x250   :  { %3281 = vmatpush3.bf16.msra.mxu1 %v4409_v41  ;;  %v1077_v41 = vrot.slane %v853_v48, 1 }
 0x251   :  { %3304 = vmatprep.subr.bf16.mxu1 %v3977_v0 }
 0x252   :  { %3261 = vmatpush3.bf16.msra.mxu0 %v3951_v38 }
 0x253   :  { %3283 = vmatmul.mubr.msk.bf16.vlgmr.msra.gmra.mrb[20].mxu1 %vm471_vm2, %v1182_v54  ;;  %3262 = vmatprep.subr.bf16.mxu0 %v3977_v0 }
 0x254   :  { %3305 = vmatpush3.bf16.msra.mxu1 %v3946_v26  ;;  %3318 = vmatprep.mubr.msk.bf16.mxu1 %vm3978_vm0, %v3977_v0 }
 0x255   :  { %3306 = vmatprep.subr.bf16.mxu1 %v3977_v0 }
 0x256   :  { %3263 = vmatpush3.bf16.msra.mxu0 %v3952_v40 }
 0x257   :  { %3286 = vmatprep.subr.bf16.mxu0 %v3977_v0 }
 0x258   :  { %3307 = vmatpush3.bf16.msra.mxu1 %v3947_v30 }
 0x259   :  { %3265 = vmatmul.mubr.msk.bf16.vlgmr.msra.gmra.mrb[20].mxu0 %vm471_vm2, %v1077_v41  ;;  %3308 = vmatprep.subr.bf16.mxu1 %v3977_v0  ;;  %v4653_v41 = vld [vmem:[%s4959_s11 + $0x8] sm:$0xff]  }
 0x25a   :  { %3287 = vmatpush3.bf16.msra.mxu0 %v4318_v28  ;;  %3300 = vmatprep.mubr.msk.bf16.mxu0 %vm3978_vm0, %v3977_v0  ;;  %v1271_v28 = vrot.slane %v4429_v49, 1 }
 0x25b   :  { %3288 = vmatprep.subr.bf16.mxu0 %v3977_v0 }
 0x25c   :  { %3309 = vmatpush3.bf16.msra.mxu1 %v3948_v32 }
 0x25d   :  { %3310 = vmatprep.subr.bf16.mxu1 %v3977_v0 }
 0x25e   :  { %3289 = vmatpush3.bf16.msra.mxu0 %v4325_v29  ;;  %v1320_v29 = vld [vmem:[%s4957_s10] sm:$0xff] }
 0x25f   :  { %3290 = vmatprep.subr.bf16.mxu0 %v3977_v0 }
 0x260   :  { %3311 = vmatpush3.bf16.msra.mxu1 %v3949_v51 }
 0x261   :  { %3312 = vmatprep.subr.bf16.mxu1 %v3977_v0 }
 0x262   :  { %3291 = vmatpush3.bf16.msra.mxu0 %v4338_v31  ;;  %v1321_v31 = vld [vmem:[%s4957_s10 + $0x8] sm:$0xff] }
 0x263   :  { %3292 = vmatprep.subr.bf16.mxu0 %v3977_v0 }
 0x264   :  { %3313 = vmatpush3.bf16.msra.mxu1 %v3950_v36 }
 0x265   :  { %3314 = vmatprep.subr.bf16.mxu1 %v3977_v0 }
 0x266   :  { %3293 = vmatpush3.bf16.msra.mxu0 %v4352_v33  ;;  %v1322_v33 = vld [vmem:[%s4957_s10 + $0x10] sm:$0xff] }
 0x267   :  { %3294 = vmatprep.subr.bf16.mxu0 %v3977_v0 }
 0x268   :  { %3315 = vmatpush3.bf16.msra.mxu1 %v3951_v38 }
 0x269   :  { %3316 = vmatprep.subr.bf16.mxu1 %v3977_v0 }
 0x26a   :  { %3295 = vmatpush3.bf16.msra.mxu0 %v4366_v35  ;;  %v4519_v35 = vpack.c.bf16 %v1321_v31, %v1320_v29  ;;  %v4666_v29 = vld [vmem:[%s4959_s11 + $0x10] sm:$0xff]   ;;  %v4673_v31 = vld [vmem:[%s4959_s11 + $0x38] sm:$0xff]  }
 0x26b   :  { %3296 = vmatprep.subr.bf16.mxu0 %v3977_v0 }
 0x26c   :  { %3317 = vmatpush3.bf16.msra.mxu1 %v3952_v40  ;;  %v4646_v40 = vld [vmem:[%s4959_s11] sm:$0xff]  }
 0x26d   :  { %3755 = vmatprep.subr.bf16.mxu1 %v4519_v35 }
 0x26e   :  { %3297 = vmatpush3.bf16.msra.mxu0 %v4378_v37  ;;  %v1323_v37 = vld [vmem:[%s4957_s10 + $0x18] sm:$0xff] }
 0x26f   :  { %3319 = vmatmul.mubr.msk.bf16.vlgmr.msra.gmra.mrb[24].mxu1 %vm471_vm2, %v1271_v28  ;;  %3298 = vmatprep.subr.bf16.mxu0 %v3977_v0  ;;  %v4659_v28 = vld [vmem:[%s4959_s11 + $0x30] sm:$0xff]  }
 0x270   :  { %3757 = vmatpush3.bf16.msra.mxu1 %v4519_v35 }
 0x272   :  { %3299 = vmatpush3.bf16.msra.mxu0 %v4392_v39  ;;  %v4524_v39 = vpack.c.bf16 %v1323_v37, %v1322_v33  ;;  %v4680_v33 = vld [vmem:[%s4959_s11 + $0x18] sm:$0xff]   ;;  %v4692_v37 = vld [vmem:[%s4959_s11 + $0x20] sm:$0xff]  }
 0x273   :  { %3731 = vmatprep.subr.bf16.mxu0 %v4519_v35 }
 0x274   :  { %3759 = vmatprep.subr.bf16.mxu1 %v4524_v39 }
 0x275   :  { %3301 = vmatmul.mubr.msk.bf16.vlgmr.msra.gmra.mrb[24].mxu0 %vm471_vm2, %v4429_v49  ;;  %3761 = vmatpush3.bf16.msra.mxu1 %v4524_v39 }
 0x276   :  { %3733 = vmatpush3.bf16.msra.mxu0 %v4519_v35  ;;  %3763 = vmatprep.subr.bf16.mxu1 %v4538_v57 }
 0x277   :  { %3735 = vmatprep.subr.bf16.mxu0 %v4524_v39 }
 0x279   :  { %3765 = vmatpush3.bf16.msra.mxu1 %v4538_v57 }
 0x27a   :  { %3737 = vmatpush3.bf16.msra.mxu0 %v4524_v39  ;;  %3767 = vmatprep.subr.bf16.mxu1 %v4552_v60 }
 0x27b   :  { %3739 = vmatprep.subr.bf16.mxu0 %v4538_v57 }
 0x27d   :  { %3769 = vmatpush3.bf16.msra.mxu1 %v4552_v60 }
 0x27e   :  { %3741 = vmatpush3.bf16.msra.mxu0 %v4538_v57  ;;  %3771 = vmatprep.subr.bf16.mxu1 %v4564_v63 }
 0x27f   :  { %3743 = vmatprep.subr.bf16.mxu0 %v4552_v60 }
 0x281   :  { %3773 = vmatpush3.bf16.msra.mxu1 %v4564_v63 }
 0x282   :  { %3745 = vmatpush3.bf16.msra.mxu0 %v4552_v60  ;;  %3775 = vmatprep.subr.bf16.mxu1 %v4576_v3 }
 0x283   :  { %3747 = vmatprep.subr.bf16.mxu0 %v4564_v63 }
 0x285   :  { %3777 = vmatpush3.bf16.msra.mxu1 %v4576_v3 }
 0x286   :  { %3749 = vmatpush3.bf16.msra.mxu0 %v4564_v63  ;;  %3803 = vmatprep.subr.bf16.mxu1 %v4519_v35 }
 0x287   :  { %3751 = vmatprep.subr.bf16.mxu0 %v4576_v3 }
 0x28a   :  { %3753 = vmatpush3.bf16.msra.mxu0 %v4576_v3 }
 0x28b   :  { %3779 = vmatprep.subr.bf16.mxu0 %v4519_v35 }
 0x30a   :  { %v1054_v4 = vpop.f32.mrb[16].mxu1 }
 0x30b   :  { %v3248_v5 = vpop.f32.mrb[17].mxu1 }
 0x30c   :  { %v1057_v6 = vpop.f32.mrb[18].mxu1 }
 0x30d   :  { %v3249_v7 = vpop.f32.mrb[19].mxu1 }
 0x310   :  { %v969_v8 = vpop.f32.mrb[16].mxu0 }
 0x311   :  { %v1055_v9 = vadd.f32 %v1054_v4, %v969_v8  ;;  %v3230_v11 = vpop.f32.mrb[17].mxu0 }
 0x312   :  { %v972_v12 = vpop.f32.mrb[18].mxu0 }
 0x313   :  { %v1058_v13 = vadd.f32 %v1057_v6, %v972_v12  ;;  %v3231_v14 = vpop.f32.mrb[19].mxu0 }
 0x326   :  { %v1220_v15 = vpop.f32.mrb[20].mxu1 }
 0x327   :  { %v3284_v16 = vpop.f32.mrb[21].mxu1 }
 0x328   :  { %v1223_v17 = vpop.f32.mrb[22].mxu1 }
 0x329   :  { %v3285_v18 = vpop.f32.mrb[23].mxu1 }
 0x32c   :  { %v1157_v20 = vpop.f32.mrb[20].mxu0 }
 0x32d   :  { %v1164_v22 = vadd.f32 %v1157_v20, %v1055_v9  ;;  %v3266_v24 = vpop.f32.mrb[21].mxu0 }
 0x32e   :  { %v1160_v25 = vpop.f32.mrb[22].mxu0 }
 0x32f   :  { %v1165_v27 = vadd.f32 %v1160_v25, %v1058_v13  ;;  %v3267_v42 = vpop.f32.mrb[23].mxu0  ;;  %v4589_v51 = vadd.f32 %v2659_v19, %v1164_v22 }
 0x330   :  { %v1685_v42 = vld [vmem:[%s4960_s8] sm:$0x1] }
 0x331   :  { %v1332_v38 = vmul.f32 %v4589_v51, %v4589_v51  ;;  %v4627_v53 = vadd.f32 %v2659_v19, %v1165_v27 }
 0x333   :  { %v1333_v54 = vmul.f32 %v4627_v53, %v4627_v53 }
 0x342   :  { %v1309_v43 = vpop.f32.mrb[24].mxu1 }
 0x343   :  { %v3320_v44 = vpop.f32.mrb[25].mxu1 }
 0x344   :  { %v1312_v45 = vpop.f32.mrb[26].mxu1 }
 0x345   :  { %v3321_v46 = vpop.f32.mrb[27].mxu1 }
 0x348   :  { %v1263_v47 = vpop.f32.mrb[24].mxu0 }
 0x349   :  { %v1264_v48 = vadd.f32 %v1263_v47, %v1220_v15  ;;  %v3302_v49 = vpop.f32.mrb[25].mxu0 }
 0x34a   :  { %v1266_v21 = vpop.f32.mrb[26].mxu0 }
 0x34b   :  { %v1316_v23 = vadd.f32 %v1309_v43, %v1264_v48  ;;  %v1267_v26 = vadd.f32 %v1266_v21, %v1223_v17  ;;  %v3303_v50 = vpop.f32.mrb[27].mxu0 }
 0x34d   :  { %v4587_v30 = vadd.f32 %v2659_v19, %v1316_v23  ;;  %v1317_v32 = vadd.f32 %v1312_v45, %v1267_v26  ;;  %v1689_v45 = vld [vmem:[%s4961_s9] sm:$0x1] }
 0x34f   :  { %v4591_v34 = vadd.f32 %v2659_v19, %v1317_v32  ;;  %3346 = vmatprep.mubr.msk.f32.mxu0 %vm1334_vm4, %v4587_v30  ;;  %v1416_v36 = vmul.f32 %v4587_v30, %v4587_v30 }
 0x351   :  { %v1417_v52 = vmul.f32 %v4591_v34, %v4591_v34  ;;  %3347 = vmatmul.mubr.msk.f32.vlgmr.msra.gmra.mrb[14].mxu0 %vm1334_vm4, %v4591_v34  ;;  %3373 = vmatprep.mubr.msk.f32.mxu1 %vm1334_vm4, %v1416_v36 }
 0x352   :  { %3781 = vmatpush3.bf16.msra.mxu0 %v4519_v35  ;;  %3400 = vmatprep.mubr.msk.f32.mxu0 %vm1334_vm4, %v4589_v51 }
 0x353   :  { %3374 = vmatmul.mubr.msk.f32.vlgmr.msra.gmra.mrb[14].mxu1 %vm1334_vm4, %v1417_v52  ;;  %3783 = vmatprep.subr.bf16.mxu0 %v4524_v39 }
 0x354   :  { %3805 = vmatpush3.bf16.msra.mxu1 %v4519_v35  ;;  %3427 = vmatprep.mubr.msk.f32.mxu1 %vm1334_vm4, %v1332_v38  ;;  %v4687_v35 = vld [vmem:[%s4959_s11 + $0x40] sm:$0xff]  }
 0x355   :  { %3807 = vmatprep.subr.bf16.mxu1 %v4524_v39 }
 0x356   :  { %3785 = vmatpush3.bf16.msra.mxu0 %v4524_v39 }
 0x357   :  { %3787 = vmatprep.subr.bf16.mxu0 %v4538_v57 }
 0x358   :  { %3809 = vmatpush3.bf16.msra.mxu1 %v4524_v39  ;;  %v4699_v39 = vld [vmem:[%s4959_s11 + $0x48] sm:$0xff]  }
 0x359   :  { %3811 = vmatprep.subr.bf16.mxu1 %v4538_v57 }
 0x35a   :  { %3789 = vmatpush3.bf16.msra.mxu0 %v4538_v57 }
 0x35b   :  { %3791 = vmatprep.subr.bf16.mxu0 %v4552_v60 }
 0x35c   :  { %3813 = vmatpush3.bf16.msra.mxu1 %v4538_v57  ;;  %v4723_v57 = vld [vmem:[%s4959_s11 + $0x58] sm:$0xff]  }
 0x35d   :  { %3815 = vmatprep.subr.bf16.mxu1 %v4552_v60 }
 0x35e   :  { %3793 = vmatpush3.bf16.msra.mxu0 %v4552_v60 }
 0x35f   :  { %3795 = vmatprep.subr.bf16.mxu0 %v4564_v63 }
 0x360   :  { %3817 = vmatpush3.bf16.msra.mxu1 %v4552_v60 }
 0x361   :  { %3819 = vmatprep.subr.bf16.mxu1 %v4564_v63 }
 0x362   :  { %3797 = vmatpush3.bf16.msra.mxu0 %v4564_v63 }
 0x363   :  { %3799 = vmatprep.subr.bf16.mxu0 %v4576_v3 }
 0x364   :  { %3821 = vmatpush3.bf16.msra.mxu1 %v4564_v63 }
 0x365   :  { %3823 = vmatprep.subr.bf16.mxu1 %v4576_v3 }
 0x366   :  { %3801 = vmatpush3.bf16.msra.mxu0 %v4576_v3 }
 0x367   :  { %3430 = vmatprep.subr.bf16.mxu0 %v3977_v0 }
 0x368   :  { %3825 = vmatpush3.bf16.msra.mxu1 %v4576_v3 }
 0x369   :  { %3401 = vmatmul.mubr.msk.f32.vlgmr.msra.gmra.mrb[14].mxu0 %vm1334_vm4, %v4627_v53  ;;  %3446 = vmatprep.subr.bf16.mxu1 %v3977_v0 }
 0x36a   :  { %3442 = vmatprep.mubr.msk.bf16.mxu0 %vm3978_vm0, %v3977_v0  ;;  %3431 = vmatpush3.bf16.msra.mxu0 %v4659_v28 }
 0x36b   :  { %3428 = vmatmul.mubr.msk.f32.vlgmr.msra.gmra.mrb[14].mxu1 %vm1334_vm4, %v1333_v54  ;;  %3432 = vmatprep.subr.bf16.mxu0 %v3977_v0 }
 0x36c   :  { %3458 = vmatprep.mubr.msk.bf16.mxu1 %vm3978_vm0, %v3977_v0  ;;  %3447 = vmatpush3.bf16.msra.mxu1 %v4646_v40 }
 0x36d   :  { %3448 = vmatprep.subr.bf16.mxu1 %v3977_v0 }
 0x36e   :  { %3433 = vmatpush3.bf16.msra.mxu0 %v4673_v31 }
 0x36f   :  { %3434 = vmatprep.subr.bf16.mxu0 %v3977_v0 }
 0x370   :  { %3449 = vmatpush3.bf16.msra.mxu1 %v4653_v41 }
 0x371   :  { %3450 = vmatprep.subr.bf16.mxu1 %v3977_v0 }
 0x372   :  { %3435 = vmatpush3.bf16.msra.mxu0 %v4687_v35 }
 0x373   :  { %3436 = vmatprep.subr.bf16.mxu0 %v3977_v0 }
 0x374   :  { %3451 = vmatpush3.bf16.msra.mxu1 %v4666_v29 }
 0x375   :  { %3452 = vmatprep.subr.bf16.mxu1 %v3977_v0 }
 0x376   :  { %3437 = vmatpush3.bf16.msra.mxu0 %v4699_v39 }
 0x377   :  { %3438 = vmatprep.subr.bf16.mxu0 %v3977_v0 }
 0x378   :  { %3453 = vmatpush3.bf16.msra.mxu1 %v4680_v33 }
 0x379   :  { %3454 = vmatprep.subr.bf16.mxu1 %v3977_v0 }
 0x37a   :  { %3439 = vmatpush3.bf16.msra.mxu0 %v4713_v56 }
 0x37b   :  { %3440 = vmatprep.subr.bf16.mxu0 %v3977_v0 }
 0x37c   :  { %3455 = vmatpush3.bf16.msra.mxu1 %v4692_v37 }
 0x37d   :  { %3456 = vmatprep.subr.bf16.mxu1 %v3977_v0 }
 0x37e   :  { %3441 = vmatpush3.bf16.msra.mxu0 %v4723_v57 }
 0x37f   :  { %3462 = vmatprep.subr.bf16.mxu0 %v3977_v0 }
 0x380   :  { %3457 = vmatpush3.bf16.msra.mxu1 %v4706_v55 }
 0x381   :  { %3478 = vmatprep.subr.bf16.mxu1 %v3977_v0 }
 0x43c   :  { %v3402_v58 = vpop.f32.mrb[14].mxu0 }
 0x43d   :  { %v1663_v59 = vsel %vm1662_vm5, %v3402_v58, 0.0  ;;  %v1571_v60 = vpop.f32.mrb[15].mxu0 }
 0x43e   :  { %v1661_v61 = vsel %vm1334_vm4, %v1571_v60, 0.0  ;;  %v3429_v62 = vpop.f32.mrb[14].mxu1 }
 0x43f   :  { %v1664_v63 = vadd.f32 %v1663_v59, %v1661_v61  ;;  %v1672_v1 = vsel %vm1662_vm5, %v3429_v62, 0.0  ;;  %v1652_v2 = vpop.f32.mrb[15].mxu1 }
 0x440   :  { %v1671_v3 = vsel %vm1334_vm4, %v1652_v2, 0.0 }
 0x441   :  { %v1665_v4 = vrot.slane %v1664_v63, 4  ;;  %v1673_v5 = vadd.f32 %v1672_v1, %v1671_v3 }
 0x443   :  { %v1666_v6 = vadd.f32 %v1665_v4, %v1664_v63  ;;  %v1674_v7 = vrot.slane %v1673_v5, 4  ;;  %v2163_v4 = vld [vmem:[%s4962_s15 + $0x20] sm:$0xff] }
 0x445   :  { %v1667_v8 = vrot.slane %v1666_v6, 2  ;;  %v1675_v9 = vadd.f32 %v1674_v7, %v1673_v5  ;;  %v2164_v5 = vld [vmem:[%s4962_s15 + $0x28] sm:$0xff]  ;;  %v2165_v7 = vld [vmem:[%s4962_s15 + $0x30] sm:$0xff] }
 0x447   :  { %v1668_v11 = vadd.f32 %v1667_v8, %v1666_v6  ;;  %v1676_v12 = vrot.slane %v1675_v9, 2  ;;  %v4843_v6 = vpack.c.bf16 %v2164_v5, %v2163_v4  ;;  %v2166_v8 = vld [vmem:[%s4962_s15 + $0x38] sm:$0xff] }
 0x449   :  { %v1669_v13 = vrot.slane %v1668_v11, 1  ;;  %v1677_v14 = vadd.f32 %v1676_v12, %v1675_v9  ;;  %v4855_v9 = vpack.c.bf16 %v2166_v8, %v2165_v7  ;;  %v2168_v12 = vld [vmem:[%s4962_s15 + $0x48] sm:$0xff] }
 0x44b   :  { %v1670_v15 = vadd.f32 %v1669_v13, %v1668_v11  ;;  %v1678_v16 = vrot.slane %v1677_v14, 1  ;;  %v2167_v11 = vld [vmem:[%s4962_s15 + $0x40] sm:$0xff] }
 0x44c   :  { %v4867_v13 = vpack.c.bf16 %v2168_v12, %v2167_v11 }
 0x44d   :  { %v1680_v17 = vmul.f32 0.0034722222, %v1670_v15  ;;  %v1679_v18 = vadd.f32 %v1678_v16, %v1677_v14 }
 0x44f   :  { %v1682_v20 = vmul.f32 %v1680_v17, %v1680_v17  ;;  %v1681_v22 = vmul.f32 0.0034722222, %v1679_v18 }
 0x451   :  { %v1683_v24 = vsub.f32 %v1681_v22, %v1682_v20 }
 0x453   :  { %v1684_v25 = vmax.f32 %v1683_v24, 0.0 }
 0x455   :  { %v1686_v27 = vadd.f32 1e-05, %v1684_v25 }
 0x457   :  { %3973 = vrsqrt.f32 %v1686_v27 }
 0x461   :  { %v3974_v43 = vpop.eup %3973 }
 0x462   :  { %v1688_v44 = vmul.f32 %v3974_v43, %v1685_v42 }
 0x464   :  { %v1690_v46 = vmul.f32 %v1688_v44, %v1680_v17  ;;  %v1696_v47 = vrot.slane %v1688_v44, %v4418_v10 }
 0x466   :  { %v1691_v48 = vsub.f32 %v1689_v45, %v1690_v46  ;;  %v1698_v49 = vmul.f32 %v1696_v47, %v4589_v51  ;;  %v1699_v21 = vmul.f32 %v1696_v47, %v4627_v53  ;;  %v1710_v23 = vmul.f32 %v1696_v47, %v4587_v30  ;;  %v3965_v53 = vld [vmem:[%s4959_s11 + $0x60] sm:$0xff]  }
 0x467   :  { %v1711_v26 = vmul.f32 %v1696_v47, %v4591_v34 }
 0x468   :  { %v1704_v19 = vrot.slane %v1691_v48, %v4418_v10 }
 0x46a   :  { %v1706_v50 = vadd.f32 %v1704_v19, %v1698_v49  ;;  %v1707_v32 = vadd.f32 %v1704_v19, %v1699_v21  ;;  %v1712_v36 = vadd.f32 %v1710_v23, %v1704_v19  ;;  %v1713_v52 = vadd.f32 %v1711_v26, %v1704_v19 }
 0x46c   :  { %v1708_v38 = vmax.f32 %v1706_v50, 0.0  ;;  %v1709_v54 = vmax.f32 %v1707_v32, 0.0  ;;  %v1714_v58 = vmax.f32 %v1712_v36, 0.0  ;;  %v1715_v59 = vmax.f32 %v1713_v52, 0.0 }
 0x46e   :  { %v1716_v60 = vpack.c.bf16 %v1709_v54, %v1708_v38  ;;  %v4741_v61 = vpack.c.bf16 %v1715_v59, %v1714_v58  ;;  %v2716_v58 = vld [vmem:[%s4963_s12] ss:$0 sm:$0xff] }
 0x470   :  { %3459 = vmatmul.mubr.msk.bf16.vlgmr.msra.gmra.mrb[28].mxu1 %vm1334_vm4, %v1716_v60  ;;  %v1745_v51 = vshll.u32 %v1716_v60, 16  ;;  %v1743_v30 = vshrl.u32 %v1716_v60, 16  ;;  %v2018_v63 = vshll.u32 %v4741_v61, 16  ;;  %v2016_v2 = vshrl.u32 %v4741_v61, 16 }
 0x471   :  { %3479 = vmatpush3.bf16.msra.mxu1 %v4659_v28  ;;  %3490 = vmatprep.mubr.msk.bf16.mxu1 %vm3978_vm0, %v3977_v0  ;;  %v3966_v28 = vld [vmem:[%s4959_s11 + $0x68] sm:$0xff]  }
 0x472   :  { %3480 = vmatprep.subr.bf16.mxu1 %v3977_v0  ;;  %v1747_v34 = vrot.slane %v1745_v51, 1  ;;  %v2020_v1 = vrot.slane %v2018_v63, 1 }
 0x474   :  { %v1748_v62 = vor.u32 %v1747_v34, %v1743_v30  ;;  %v2021_v3 = vor.u32 %v2020_v1, %v2016_v2 }
 0x475   :  { %3481 = vmatpush3.bf16.msra.mxu1 %v4673_v31  ;;  %v3967_v31 = vld [vmem:[%s4959_s11 + $0x70] sm:$0xff]  }
 0x476   :  { %3443 = vmatmul.mubr.msk.bf16.vlgmr.msra.gmra.mrb[28].mxu0 %vm1334_vm4, %v1748_v62  ;;  %3482 = vmatprep.subr.bf16.mxu1 %v3977_v0 }
 0x477   :  { %3463 = vmatpush3.bf16.msra.mxu0 %v3965_v53  ;;  %3474 = vmatprep.mubr.msk.bf16.mxu0 %vm3978_vm0, %v3977_v0 }
 0x478   :  { %3464 = vmatprep.subr.bf16.mxu0 %v3977_v0 }
 0x479   :  { %3483 = vmatpush3.bf16.msra.mxu1 %v4687_v35  ;;  %v3968_v35 = vld [vmem:[%s4959_s11 + $0x78] sm:$0xff]  }
 0x47a   :  { %3484 = vmatprep.subr.bf16.mxu1 %v3977_v0 }
 0x47b   :  { %3465 = vmatpush3.bf16.msra.mxu0 %v3966_v28 }
 0x47c   :  { %3466 = vmatprep.subr.bf16.mxu0 %v3977_v0 }
 0x47d   :  { %3485 = vmatpush3.bf16.msra.mxu1 %v4699_v39  ;;  %v3969_v39 = vld [vmem:[%s4959_s11 + $0x80] sm:$0xff]  }
 0x47e   :  { %3486 = vmatprep.subr.bf16.mxu1 %v3977_v0 }
 0x47f   :  { %3467 = vmatpush3.bf16.msra.mxu0 %v3967_v31 }
 0x480   :  { %3468 = vmatprep.subr.bf16.mxu0 %v3977_v0 }
 0x481   :  { %3487 = vmatpush3.bf16.msra.mxu1 %v4713_v56  ;;  %v3970_v56 = vld [vmem:[%s4959_s11 + $0x88] sm:$0xff]  }
 0x482   :  { %3488 = vmatprep.subr.bf16.mxu1 %v3977_v0 }
 0x483   :  { %3469 = vmatpush3.bf16.msra.mxu0 %v3968_v35 }
 0x484   :  { %3470 = vmatprep.subr.bf16.mxu0 %v3977_v0 }
 0x485   :  { %3489 = vmatpush3.bf16.msra.mxu1 %v4723_v57  ;;  %v1922_v57 = vrot.slane %v1716_v60, 1 }
 0x486   :  { %3510 = vmatprep.subr.bf16.mxu1 %v3977_v0 }
 0x487   :  { %3471 = vmatpush3.bf16.msra.mxu0 %v3969_v39 }
 0x488   :  { %3491 = vmatmul.mubr.msk.bf16.vlgmr.msra.gmra.mrb[32].mxu1 %vm1334_vm4, %v2021_v3  ;;  %3472 = vmatprep.subr.bf16.mxu0 %v3977_v0 }
 0x489   :  { %3511 = vmatpush3.bf16.msra.mxu1 %v3965_v53  ;;  %3522 = vmatprep.mubr.msk.bf16.mxu1 %vm3978_vm0, %v3977_v0 }
 0x48a   :  { %3512 = vmatprep.subr.bf16.mxu1 %v3977_v0 }
 0x48b   :  { %3473 = vmatpush3.bf16.msra.mxu0 %v3970_v56 }
 0x48c   :  { %3494 = vmatprep.subr.bf16.mxu0 %v3977_v0 }
 0x48d   :  { %3513 = vmatpush3.bf16.msra.mxu1 %v3966_v28 }
 0x48e   :  { %3475 = vmatmul.mubr.msk.bf16.vlgmr.msra.gmra.mrb[32].mxu0 %vm1334_vm4, %v1922_v57  ;;  %3514 = vmatprep.subr.bf16.mxu1 %v3977_v0 }
 0x48f   :  { %3495 = vmatpush3.bf16.msra.mxu0 %v4646_v40  ;;  %3506 = vmatprep.mubr.msk.bf16.mxu0 %vm3978_vm0, %v3977_v0  ;;  %v2110_v40 = vrot.slane %v4741_v61, 1 }
 0x490   :  { %3496 = vmatprep.subr.bf16.mxu0 %v3977_v0 }
 0x491   :  { %3515 = vmatpush3.bf16.msra.mxu1 %v3967_v31 }
 0x492   :  { %3516 = vmatprep.subr.bf16.mxu1 %v3977_v0 }
 0x493   :  { %3497 = vmatpush3.bf16.msra.mxu0 %v4653_v41  ;;  %v2159_v41 = vld [vmem:[%s4962_s15] sm:$0xff] }
 0x494   :  { %3498 = vmatprep.subr.bf16.mxu0 %v3977_v0 }
 0x495   :  { %3517 = vmatpush3.bf16.msra.mxu1 %v3968_v35 }
 0x496   :  { %3518 = vmatprep.subr.bf16.mxu1 %v3977_v0 }
 0x497   :  { %3499 = vmatpush3.bf16.msra.mxu0 %v4666_v29  ;;  %v2160_v29 = vld [vmem:[%s4962_s15 + $0x8] sm:$0xff] }
 0x498   :  { %3500 = vmatprep.subr.bf16.mxu0 %v3977_v0 }
 0x499   :  { %3519 = vmatpush3.bf16.msra.mxu1 %v3969_v39 }
 0x49a   :  { %3520 = vmatprep.subr.bf16.mxu1 %v3977_v0 }
 0x49b   :  { %3501 = vmatpush3.bf16.msra.mxu0 %v4680_v33  ;;  %v2161_v33 = vld [vmem:[%s4962_s15 + $0x10] sm:$0xff] }
 0x49c   :  { %3502 = vmatprep.subr.bf16.mxu0 %v3977_v0 }
 0x49d   :  { %3521 = vmatpush3.bf16.msra.mxu1 %v3970_v56 }
 0x49f   :  { %3503 = vmatpush3.bf16.msra.mxu0 %v4692_v37  ;;  %v4822_v37 = vpack.c.bf16 %v2160_v29, %v2159_v41 }
 0x4a0   :  { %3523 = vmatmul.mubr.msk.bf16.vlgmr.msra.gmra.mrb[36].mxu1 %vm1334_vm4, %v2110_v40  ;;  %3504 = vmatprep.subr.bf16.mxu0 %v3977_v0  ;;  %v2162_v0 = vld [vmem:[%s4962_s15 + $0x18] sm:$0xff] }
 0x4a1   :  { %3847 = vmatprep.subr.bf16.mxu1 %v4822_v37 }
 0x4a2   :  { %3849 = vmatpush3.bf16.msra.mxu1 %v4822_v37 }
 0x4a3   :  { %3505 = vmatpush3.bf16.msra.mxu0 %v4706_v55  ;;  %v4827_v55 = vpack.c.bf16 %v2162_v0, %v2161_v33 }
 0x4a4   :  { %3827 = vmatprep.subr.bf16.mxu0 %v4822_v37 }
 0x4a5   :  { %3851 = vmatprep.subr.bf16.mxu1 %v4827_v55 }
 0x4a6   :  { %3507 = vmatmul.mubr.msk.bf16.vlgmr.msra.gmra.mrb[36].mxu0 %vm1334_vm4, %v4741_v61  ;;  %3853 = vmatpush3.bf16.msra.mxu1 %v4827_v55 }
 0x4a7   :  { %3829 = vmatpush3.bf16.msra.mxu0 %v4822_v37  ;;  %3855 = vmatprep.subr.bf16.mxu1 %v4843_v6 }
 0x4a8   :  { %3831 = vmatprep.subr.bf16.mxu0 %v4827_v55 }
 0x4aa   :  { %3857 = vmatpush3.bf16.msra.mxu1 %v4843_v6 }
 0x4ab   :  { %3833 = vmatpush3.bf16.msra.mxu0 %v4827_v55  ;;  %3859 = vmatprep.subr.bf16.mxu1 %v4855_v9 }
 0x4ac   :  { %3835 = vmatprep.subr.bf16.mxu0 %v4843_v6 }
 0x4ae   :  { %3861 = vmatpush3.bf16.msra.mxu1 %v4855_v9 }
 0x4af   :  { %3837 = vmatpush3.bf16.msra.mxu0 %v4843_v6  ;;  %3863 = vmatprep.subr.bf16.mxu1 %v4867_v13 }
 0x4b0   :  { %3839 = vmatprep.subr.bf16.mxu0 %v4855_v9 }
 0x4b2   :  { %3865 = vmatpush3.bf16.msra.mxu1 %v4867_v13 }
 0x4b3   :  { %3841 = vmatpush3.bf16.msra.mxu0 %v4855_v9  ;;  %3887 = vmatprep.subr.bf16.mxu1 %v4822_v37 }
 0x4b4   :  { %3843 = vmatprep.subr.bf16.mxu0 %v4867_v13 }
 0x4b7   :  { %3845 = vmatpush3.bf16.msra.mxu0 %v4867_v13 }
 0x4b8   :  { %3867 = vmatprep.subr.bf16.mxu0 %v4822_v37 }
 0x543   :  { %v1901_v14 = vpop.f32.mrb[28].mxu1 }
 0x544   :  { %v3460_v15 = vpop.f32.mrb[29].mxu1 }
 0x545   :  { %v1904_v16 = vpop.f32.mrb[30].mxu1 }
 0x546   :  { %v3461_v17 = vpop.f32.mrb[31].mxu1 }
 0x549   :  { %v1822_v18 = vpop.f32.mrb[28].mxu0 }
 0x54a   :  { %v1902_v20 = vadd.f32 %v1901_v14, %v1822_v18  ;;  %v3444_v22 = vpop.f32.mrb[29].mxu0 }
 0x54b   :  { %v1825_v24 = vpop.f32.mrb[30].mxu0  ;;  %v2522_v22 = vld [vmem:[%s4964_s13] sm:$0x1] }
 0x54c   :  { %v1905_v25 = vadd.f32 %v1904_v16, %v1825_v24  ;;  %v3445_v27 = vpop.f32.mrb[31].mxu0 }
 0x54d   :  { %v2526_v27 = vld [vmem:[%s4965_s14] sm:$0x1] }
 0x55b   :  { %v2059_v42 = vpop.f32.mrb[32].mxu1 }
 0x55c   :  { %v3492_v43 = vpop.f32.mrb[33].mxu1 }
 0x55d   :  { %v2062_v44 = vpop.f32.mrb[34].mxu1 }
 0x55e   :  { %v3493_v45 = vpop.f32.mrb[35].mxu1 }
 0x561   :  { %v1996_v46 = vpop.f32.mrb[32].mxu0 }
 0x562   :  { %v2003_v47 = vadd.f32 %v1996_v46, %v1902_v20  ;;  %v3476_v48 = vpop.f32.mrb[33].mxu0 }
 0x563   :  { %v1999_v49 = vpop.f32.mrb[34].mxu0 }
 0x564   :  { %v2004_v21 = vadd.f32 %v1999_v49, %v1905_v25  ;;  %v3477_v19 = vpop.f32.mrb[35].mxu0  ;;  %v4880_v34 = vadd.f32 %v2716_v58, %v2003_v47 }
 0x566   :  { %v2169_v31 = vmul.f32 %v4880_v34, %v4880_v34  ;;  %v2013_v63 = vadd.f32 %v2716_v58, %v2004_v21 }
 0x568   :  { %v2170_v35 = vmul.f32 %v2013_v63, %v2013_v63 }
 0x573   :  { %v2148_v23 = vpop.f32.mrb[36].mxu1 }
 0x574   :  { %v3524_v26 = vpop.f32.mrb[37].mxu1 }
 0x575   :  { %v2151_v50 = vpop.f32.mrb[38].mxu1 }
 0x576   :  { %v3525_v32 = vpop.f32.mrb[39].mxu1 }
 0x579   :  { %v2102_v36 = vpop.f32.mrb[36].mxu0 }
 0x57a   :  { %v2103_v52 = vadd.f32 %v2102_v36, %v2059_v42  ;;  %v3508_v38 = vpop.f32.mrb[37].mxu0 }
 0x57b   :  { %v2105_v54 = vpop.f32.mrb[38].mxu0 }
 0x57c   :  { %v2155_v59 = vadd.f32 %v2148_v23, %v2103_v52  ;;  %v2106_v60 = vadd.f32 %v2105_v54, %v2062_v44  ;;  %v3509_v61 = vpop.f32.mrb[39].mxu0 }
 0x57e   :  { %v4878_v51 = vadd.f32 %v2716_v58, %v2155_v59  ;;  %v2156_v30 = vadd.f32 %v2151_v50, %v2106_v60 }
 0x580   :  { %v4882_v53 = vadd.f32 %v2716_v58, %v2156_v30  ;;  %3546 = vmatprep.mubr.msk.f32.mxu0 %vm2171_vm6, %v4878_v51  ;;  %v2253_v62 = vmul.f32 %v4878_v51, %v4878_v51 }
 0x582   :  { %v2254_v28 = vmul.f32 %v4882_v53, %v4882_v53  ;;  %3547 = vmatmul.mubr.msk.f32.vlgmr.msra.gmra.mrb[40].mxu0 %vm2171_vm6, %v4882_v53  ;;  %3569 = vmatprep.mubr.msk.f32.mxu1 %vm2171_vm6, %v2253_v62 }
 0x583   :  { %3869 = vmatpush3.bf16.msra.mxu0 %v4822_v37  ;;  %3592 = vmatprep.mubr.msk.f32.mxu0 %vm2171_vm6, %v4880_v34 }
 0x584   :  { %3570 = vmatmul.mubr.msk.f32.vlgmr.msra.gmra.mrb[40].mxu1 %vm2171_vm6, %v2254_v28  ;;  %3871 = vmatprep.subr.bf16.mxu0 %v4827_v55 }
 0x585   :  { %3889 = vmatpush3.bf16.msra.mxu1 %v4822_v37  ;;  %3615 = vmatprep.mubr.msk.f32.mxu1 %vm2171_vm6, %v2169_v31 }
 0x586   :  { %3891 = vmatprep.subr.bf16.mxu1 %v4827_v55 }
 0x587   :  { %3873 = vmatpush3.bf16.msra.mxu0 %v4827_v55 }
 0x588   :  { %3875 = vmatprep.subr.bf16.mxu0 %v4843_v6 }
 0x589   :  { %3893 = vmatpush3.bf16.msra.mxu1 %v4827_v55 }
 0x58a   :  { %3895 = vmatprep.subr.bf16.mxu1 %v4843_v6 }
 0x58b   :  { %3877 = vmatpush3.bf16.msra.mxu0 %v4843_v6 }
 0x58c   :  { %3879 = vmatprep.subr.bf16.mxu0 %v4855_v9 }
 0x58d   :  { %3897 = vmatpush3.bf16.msra.mxu1 %v4843_v6 }
 0x58e   :  { %3899 = vmatprep.subr.bf16.mxu1 %v4855_v9 }
 0x58f   :  { %3881 = vmatpush3.bf16.msra.mxu0 %v4855_v9 }
 0x590   :  { %3883 = vmatprep.subr.bf16.mxu0 %v4867_v13 }
 0x591   :  { %3901 = vmatpush3.bf16.msra.mxu1 %v4855_v9 }
 0x592   :  { %3903 = vmatprep.subr.bf16.mxu1 %v4867_v13 }
 0x593   :  { %3885 = vmatpush3.bf16.msra.mxu0 %v4867_v13 }
 0x595   :  { %3905 = vmatpush3.bf16.msra.mxu1 %v4867_v13 }
 0x596   :  { %3593 = vmatmul.mubr.msk.f32.vlgmr.msra.gmra.mrb[40].mxu0 %vm2171_vm6, %v2013_v63 }
 0x598   :  { %3616 = vmatmul.mubr.msk.f32.vlgmr.msra.gmra.mrb[40].mxu1 %vm2171_vm6, %v2170_v35 }
 0x669   :  { %v3594_v1 = vpop.f32.mrb[40].mxu0 }
 0x66a   :  { %v2500_v39 = vsel %vm2499_vm7, %v3594_v1, 0.0  ;;  %v2408_v2 = vpop.f32.mrb[41].mxu0 }
 0x66b   :  { %v2498_v3 = vsel %vm2171_vm6, %v2408_v2, 0.0  ;;  %v3617_v56 = vpop.f32.mrb[40].mxu1 }
 0x66c   :  { %v2501_v57 = vadd.f32 %v2500_v39, %v2498_v3  ;;  %v2509_v40 = vsel %vm2499_vm7, %v3617_v56, 0.0  ;;  %v2489_v41 = vpop.f32.mrb[41].mxu1 }
 0x66d   :  { %v2508_v29 = vsel %vm2171_vm6, %v2489_v41, 0.0 }
 0x66e   :  { %v2502_v33 = vrot.slane %v2501_v57, 4  ;;  %v2510_v37 = vadd.f32 %v2509_v40, %v2508_v29 }
 0x670   :  { %v2503_v0 = vadd.f32 %v2502_v33, %v2501_v57  ;;  %v2511_v55 = vrot.slane %v2510_v37, 4 }
 0x672   :  { %v2504_v4 = vrot.slane %v2503_v0, 2  ;;  %v2512_v5 = vadd.f32 %v2511_v55, %v2510_v37 }
 0x674   :  { %v2505_v6 = vadd.f32 %v2504_v4, %v2503_v0  ;;  %v2513_v7 = vrot.slane %v2512_v5, 2 }
 0x676   :  { %v2506_v8 = vrot.slane %v2505_v6, 1  ;;  %v2514_v9 = vadd.f32 %v2513_v7, %v2512_v5 }
 0x678   :  { %v2507_v11 = vadd.f32 %v2506_v8, %v2505_v6  ;;  %v2515_v12 = vrot.slane %v2514_v9, 1 }
 0x67a   :  { %v2517_v13 = vmul.f32 0.005, %v2507_v11  ;;  %v2516_v14 = vadd.f32 %v2515_v12, %v2514_v9 }
 0x67c   :  { %v2519_v15 = vmul.f32 %v2517_v13, %v2517_v13  ;;  %v2518_v16 = vmul.f32 0.005, %v2516_v14 }
 0x67e   :  { %v2520_v17 = vsub.f32 %v2518_v16, %v2519_v15 }
 0x680   :  { %v2521_v18 = vmax.f32 %v2520_v17, 0.0 }
 0x682   :  { %v2523_v20 = vadd.f32 1e-05, %v2521_v18 }
 0x684   :  { %3975 = vrsqrt.f32 %v2523_v20 }
 0x68e   :  { %v3976_v24 = vpop.eup %3975 }
 0x68f   :  { %v2525_v25 = vmul.f32 %v3976_v24, %v2522_v22 }
 0x691   :  { %v2527_v42 = vmul.f32 %v2525_v25, %v2517_v13  ;;  %v2533_v43 = vrot.slane %v2525_v25, %v4418_v10 }
 0x693   :  { %v2528_v44 = vsub.f32 %v2526_v27, %v2527_v42  ;;  %v2535_v45 = vmul.f32 %v2533_v43, %v4880_v34  ;;  %v2536_v46 = vmul.f32 %v2533_v43, %v2013_v63  ;;  %v2547_v48 = vmul.f32 %v2533_v43, %v4878_v51 }
 0x694   :  { %v2548_v49 = vmul.f32 %v2533_v43, %v4882_v53 }
 0x695   :  { %v2541_v47 = vrot.slane %v2528_v44, %v4418_v10 }
 0x697   :  { %v2543_v21 = vadd.f32 %v2541_v47, %v2535_v45  ;;  %v2544_v19 = vadd.f32 %v2541_v47, %v2536_v46  ;;  %v2549_v23 = vadd.f32 %v2547_v48, %v2541_v47  ;;  %v2550_v26 = vadd.f32 %v2548_v49, %v2541_v47 }
 0x699   :  { %v2545_v50 = vmax.f32 %v2543_v21, 0.0  ;;  %v2546_v32 = vmax.f32 %v2544_v19, 0.0  ;;  %v2551_v36 = vmax.f32 %v2549_v23, 0.0  ;;  %v2552_v52 = vmax.f32 %v2550_v26, 0.0 }
 0x69b   :  { %2553 = vst.msk [vmem:[%s4966_s16] sm:$0xff] %vm2171_vm6, %v2545_v50  ;;  %2728 = vst.msk [vmem:[%s4966_s16 + $0x10] sm:$0xff] %vm2171_vm6, %v2551_v36 }
 0x69c   :  { %2554 = vst.msk [vmem:[%s4966_s16 + $0x8] sm:$0x3] %vm2499_vm7, %v2546_v32  ;;  %2729 = vst.msk [vmem:[%s4966_s16 + $0x18] sm:$0x3] %vm2499_vm7, %v2552_v52 }

</bundles_post_ra>
